<compile_context>
chip_gen: v5e
topology: v5e:2x2
jax: 0.10.0
libtpu: 0.0.40
codegen_flags: <defaults>
</compile_context>

<pallas_src>
import numpy as np
import jax
import jax.numpy as jnp
from jax import lax
from jax.experimental import pallas as pl
from jax.experimental.pallas import tpu as pltpu


# ----------------------------- Pallas kernel -----------------------------

def encoder_kernel(emb_ref, wih_ref, whh_ref, b_ref,
                   o_ref, h_ref, c_ref,
                   xproj_ref):
    S, B, Ep = emb_ref.shape
    Hp = h_ref.shape[1]

    # ---- batched input projection (no recurrence dependence): one big MXU matmul ----
    e_all = emb_ref[...].reshape(S * B, Ep)                 # leading-dim collapse, no relayout
    xproj = jnp.dot(e_all, wih_ref[...], preferred_element_type=jnp.float32) + b_ref[...]
    xproj_ref[...] = xproj.reshape(S, B, 4 * Hp)

    whh = whh_ref[...]                                      # hoisted loop-invariant read

    def step(t, carry):
        h, c = carry
        gates = xproj_ref[t] + jnp.dot(h, whh, preferred_element_type=jnp.float32)
        # gate layout (i, f, o, g): one sigmoid over a contiguous (B, 3Hp) lane slice
        sig = jax.nn.sigmoid(gates[:, : 3 * Hp])
        i_g = sig[:, 0 * Hp: 1 * Hp]
        f_g = sig[:, 1 * Hp: 2 * Hp]
        o_g = sig[:, 2 * Hp: 3 * Hp]
        g_g = jnp.tanh(gates[:, 3 * Hp:])
        c_new = f_g * c + i_g * g_g
        h_new = o_g * jnp.tanh(c_new)
        o_ref[t] = h_new                                    # lane-dense (B, Hp) store
        return (h_new, c_new)

    h0 = jnp.zeros((B, Hp), jnp.float32)
    c0 = jnp.zeros((B, Hp), jnp.float32)
    h, c = lax.fori_loop(0, S, step, (h0, c0), unroll=True)
    h_ref[...] = h
    c_ref[...] = c


# ----------------------------- host-side wrapper -----------------------------

def _round_up(x, m):
    return ((x + m - 1) // m) * m


def _prep_kernel_params(params, Ep, Hp):
    """Reorder LSTM gate columns (i,f,g,o)->(i,f,o,g) and zero-pad E->Ep, H->Hp, 4H->4Hp."""
    wih, whh, b = params["wih"], params["whh"], params["b"]
    H = whh.shape[0]

    def reorder_pad(w, rows_pad):
        i_, f_, g_, o_ = jnp.split(w, 4, axis=1)            # PyTorch LSTMCell order: i, f, g, o
        out = jnp.zeros((rows_pad, 4 * Hp), jnp.float32)
        for k, blk in enumerate((i_, f_, o_, g_)):          # kernel order: i, f, o, g
            out = out.at[: blk.shape[0], k * Hp: k * Hp + H].set(blk)
        return out

    return reorder_pad(wih, Ep), reorder_pad(whh, Hp), reorder_pad(b, 1)


def encoder_forward(x_seq, params):
    """x_seq: (S, B) int32 token ids. Returns (o (S,B,H), h (B,H), c (B,H)) — same as Encoder.forward."""
    S, B = x_seq.shape
    E = params["emb_tbl"].shape[1]
    H = params["whh"].shape[0]
    Ep = _round_up(E, 128)                                  # lane-dense
    Hp = _round_up(H, 128)                                  # lane-dense
    Bp = _round_up(B, 8)                                    # sublane-dense

    # embedding lookup (gather) is glue, done in plain JAX; table padded to lane-dense Ep
    emb_tbl_p = jnp.pad(params["emb_tbl"], ((0, 0), (0, Ep - E)))
    emb = emb_tbl_p[x_seq]                                  # (S, B, Ep)
    if Bp != B:
        emb = jnp.pad(emb, ((0, 0), (0, Bp - B), (0, 0)))   # padded batch rows discarded later

    wih_k, whh_k, b_k = _prep_kernel_params(params, Ep, Hp)

    vmem = pl.BlockSpec(memory_space=pltpu.MemorySpace.VMEM)
    o_p, h_p, c_p = pl.pallas_call(
        encoder_kernel,
        out_shape=(jax.ShapeDtypeStruct((S, Bp, Hp), jnp.float32),
                   jax.ShapeDtypeStruct((Bp, Hp), jnp.float32),
                   jax.ShapeDtypeStruct((Bp, Hp), jnp.float32)),
        in_specs=[vmem, vmem, vmem, vmem],
        out_specs=(vmem, vmem, vmem),
        scratch_shapes=[pltpu.VMEM((S, Bp, 4 * Hp), jnp.float32)],
        compiler_params=pltpu.CompilerParams(vmem_limit_bytes=32 * 1024 * 1024),
    )(emb, wih_k, whh_k, b_k)

    # strip hidden-dim padding (padded columns are exactly zero) and padded batch rows
    return o_p[:, :B, :H], h_p[:B, :H], c_p[:B, :H]


# ----------------------------- pure-JAX reference -----------------------------

def reference_forward(x_seq, params):
    emb = params["emb_tbl"][x_seq]                          # (S, B, E)
    S, B, _ = emb.shape
    H = params["whh"].shape[0]
    h = jnp.zeros((B, H), jnp.float32)
    c = jnp.zeros((B, H), jnp.float32)
    outs = []
    for t in range(S):
        gates = emb[t] @ params["wih"] + h @ params["whh"] + params["b"]
        i_g, f_g, g_g, o_g = jnp.split(gates, 4, axis=1)    # PyTorch gate order
        c = jax.nn.sigmoid(f_g) * c + jax.nn.sigmoid(i_g) * jnp.tanh(g_g)
        h = jax.nn.sigmoid(o_g) * jnp.tanh(c)
        outs.append(h)
    return jnp.stack(outs, 0), h, c


def init_params(key, vocab_size, d_embed, d_hidden):
    ks = jax.random.split(key, 4)

    def init(k, shape, scale=0.1):
        return scale * jax.random.normal(k, shape, jnp.float32)

    return dict(
        # nn.Embedding(vocab_size, d_embed, padding_idx=1): row 1 zeroed
        emb_tbl=init(ks[0], (vocab_size, d_embed)).at[1].set(0.0),
        # nn.LSTMCell(d_embed, d_hidden), pre-transposed to (in, 4H); b = b_ih + b_hh folded
        wih=init(ks[1], (d_embed, 4 * d_hidden)),
        whh=init(ks[2], (d_hidden, 4 * d_hidden)),
        b=init(ks[3], (1, 4 * d_hidden)),
    )


if __name__ == "__main__":
    # small config: vocab=20, d_embed=16, d_hidden=32, seq_len=8, batch=8
    V, E, H = 20, 16, 32
    S, B = 8, 8

    key = jax.random.PRNGKey(0)
    pk, xk = jax.random.split(key)
    params = init_params(pk, V, E, H)
    x_seq = jax.random.randint(xk, (S, B), 0, V, dtype=jnp.int32)

    o, h, c = jax.block_until_ready(encoder_forward(x_seq, params))

    ref_o, ref_h, ref_c = reference_forward(x_seq, params)
    assert np.allclose(np.asarray(o), np.asarray(ref_o), atol=1e-4, rtol=1e-4)
    assert np.allclose(np.asarray(h), np.asarray(ref_h), atol=1e-4, rtol=1e-4)
    assert np.allclose(np.asarray(c), np.asarray(ref_c), atol=1e-4, rtol=1e-4)

    print("KERNEL_OK")
</pallas_src>

<mosaic_0001>
module attributes {stable_mosaic.version = 11 : i64} {
  func.func @encoder_kernel(%arg0: memref<8x8x128xf32, #tpu.memory_space<vmem>>, %arg1: memref<128x512xf32, #tpu.memory_space<vmem>>, %arg2: memref<128x512xf32, #tpu.memory_space<vmem>>, %arg3: memref<1x512xf32, #tpu.memory_space<vmem>>, %arg4: memref<8x8x128xf32, #tpu.memory_space<vmem>>, %arg5: memref<8x128xf32, #tpu.memory_space<vmem>>, %arg6: memref<8x128xf32, #tpu.memory_space<vmem>>, %arg7: memref<8x8x512xf32, #tpu.memory_space<vmem>>) attributes {dimension_semantics = [], scalar_prefetch = 0 : i64, scratch_operands = 1 : i64, tpu.core_type = #tpu.core_type<tc>} {
    %c0 = arith.constant 0 : index
    %c0_0 = arith.constant 0 : index
    %c0_1 = arith.constant 0 : index
    %0 = vector.load %arg0[%c0, %c0_0, %c0_1] : memref<8x8x128xf32, #tpu.memory_space<vmem>>, vector<8x8x128xf32>
    %1 = vector.shape_cast %0 : vector<8x8x128xf32> to vector<64x128xf32>
    %c0_2 = arith.constant 0 : index
    %c0_3 = arith.constant 0 : index
    %2 = vector.load %arg1[%c0_2, %c0_3] : memref<128x512xf32, #tpu.memory_space<vmem>>, vector<128x512xf32>
    %cst = arith.constant dense<0.000000e+00> : vector<64x512xf32>
    %3 = tpu.matmul %1, %2, %cst {dimension_numbers = #tpu.dot_dimension_numbers<[1], [0], [0], [1], [0, 0, 1, 1], [], []>} : vector<64x128xf32>, vector<128x512xf32>, vector<64x512xf32> -> vector<64x512xf32>
    %c0_4 = arith.constant 0 : index
    %c0_5 = arith.constant 0 : index
    %4 = vector.load %arg3[%c0_4, %c0_5] : memref<1x512xf32, #tpu.memory_space<vmem>>, vector<1x512xf32>
    %5 = vector.broadcast %4 : vector<1x512xf32> to vector<64x512xf32>
    %6 = arith.addf %3, %5 : vector<64x512xf32>
    %7 = vector.shape_cast %6 : vector<64x512xf32> to vector<8x8x512xf32>
    %c0_6 = arith.constant 0 : index
    %c0_7 = arith.constant 0 : index
    %c0_8 = arith.constant 0 : index
    %8 = vector.load %arg7[%c0_6, %c0_7, %c0_8] : memref<8x8x512xf32, #tpu.memory_space<vmem>>, vector<8x8x512xf32>
    tpu.vector_store %arg7[%c0_6, %c0_7, %c0_8], %7 {strides = array<i32>} : memref<8x8x512xf32, #tpu.memory_space<vmem>>, vector<8x8x512xf32>,
    %c0_9 = arith.constant 0 : index
    %c0_10 = arith.constant 0 : index
    %9 = vector.load %arg2[%c0_9, %c0_10] : memref<128x512xf32, #tpu.memory_space<vmem>>, vector<128x512xf32>
    %cst_11 = arith.constant 0.000000e+00 : f32
    %10 = vector.broadcast %cst_11 : f32 to vector<8x128xf32>
    %cst_12 = arith.constant 0.000000e+00 : f32
    %11 = vector.broadcast %cst_12 : f32 to vector<8x128xf32>
    %c0_i32 = arith.constant 0 : i32
    %12 = arith.index_cast %c0_i32 : i32 to index
    %c0_13 = arith.constant 0 : index
    %c0_14 = arith.constant 0 : index
    %13 = vector.load %arg7[%12, %c0_13, %c0_14] : memref<8x8x512xf32, #tpu.memory_space<vmem>>, vector<1x8x512xf32>
    %14 = vector.shape_cast %13 : vector<1x8x512xf32> to vector<8x512xf32>
    %cst_15 = arith.constant dense<0.000000e+00> : vector<8x512xf32>
    %15 = tpu.matmul %10, %9, %cst_15 {dimension_numbers = #tpu.dot_dimension_numbers<[1], [0], [0], [1], [0, 0, 1, 1], [], []>} : vector<8x128xf32>, vector<128x512xf32>, vector<8x512xf32> -> vector<8x512xf32>
    %16 = arith.addf %14, %15 : vector<8x512xf32>
    %17 = vector.extract_strided_slice %16 {offsets = [0, 0], sizes = [8, 384], strides = [1, 1]} : vector<8x512xf32> to vector<8x384xf32>
    %18 = arith.negf %17 : vector<8x384xf32>
    %19 = math.exp %18 : vector<8x384xf32>
    %cst_16 = arith.constant 1.000000e+00 : f32
    %20 = vector.broadcast %cst_16 : f32 to vector<8x384xf32>
    %21 = arith.addf %20, %19 : vector<8x384xf32>
    %22 = arith.divf %20, %21 : vector<8x384xf32>
    %23 = vector.extract_strided_slice %22 {offsets = [0, 0], sizes = [8, 128], strides = [1, 1]} : vector<8x384xf32> to vector<8x128xf32>
    %24 = vector.extract_strided_slice %22 {offsets = [0, 128], sizes = [8, 128], strides = [1, 1]} : vector<8x384xf32> to vector<8x128xf32>
    %25 = vector.extract_strided_slice %22 {offsets = [0, 256], sizes = [8, 128], strides = [1, 1]} : vector<8x384xf32> to vector<8x128xf32>
    %26 = vector.extract_strided_slice %16 {offsets = [0, 384], sizes = [8, 128], strides = [1, 1]} : vector<8x512xf32> to vector<8x128xf32>
    %27 = math.tanh %26 : vector<8x128xf32>
    %28 = arith.mulf %24, %11 : vector<8x128xf32>
    %29 = arith.mulf %23, %27 : vector<8x128xf32>
    %30 = arith.addf %28, %29 : vector<8x128xf32>
    %31 = math.tanh %30 : vector<8x128xf32>
    %32 = arith.mulf %25, %31 : vector<8x128xf32>
    %33 = arith.index_cast %c0_i32 : i32 to index
    %c0_17 = arith.constant 0 : index
    %c0_18 = arith.constant 0 : index
    %34 = vector.load %arg4[%33, %c0_17, %c0_18] : memref<8x8x128xf32, #tpu.memory_space<vmem>>, vector<1x8x128xf32>
    %35 = vector.shape_cast %34 : vector<1x8x128xf32> to vector<8x128xf32>
    %36 = vector.shape_cast %32 : vector<8x128xf32> to vector<1x8x128xf32>
    tpu.vector_store %arg4[%33, %c0_17, %c0_18], %36 {strides = array<i32>} : memref<8x8x128xf32, #tpu.memory_space<vmem>>, vector<1x8x128xf32>,
    %c1_i32 = arith.constant 1 : i32
    %37 = arith.index_cast %c1_i32 : i32 to index
    %c0_19 = arith.constant 0 : index
    %c0_20 = arith.constant 0 : index
    %38 = vector.load %arg7[%37, %c0_19, %c0_20] : memref<8x8x512xf32, #tpu.memory_space<vmem>>, vector<1x8x512xf32>
    %39 = vector.shape_cast %38 : vector<1x8x512xf32> to vector<8x512xf32>
    %cst_21 = arith.constant dense<0.000000e+00> : vector<8x512xf32>
    %40 = tpu.matmul %32, %9, %cst_21 {dimension_numbers = #tpu.dot_dimension_numbers<[1], [0], [0], [1], [0, 0, 1, 1], [], []>} : vector<8x128xf32>, vector<128x512xf32>, vector<8x512xf32> -> vector<8x512xf32>
    %41 = arith.addf %39, %40 : vector<8x512xf32>
    %42 = vector.extract_strided_slice %41 {offsets = [0, 0], sizes = [8, 384], strides = [1, 1]} : vector<8x512xf32> to vector<8x384xf32>
    %43 = arith.negf %42 : vector<8x384xf32>
    %44 = math.exp %43 : vector<8x384xf32>
    %cst_22 = arith.constant 1.000000e+00 : f32
    %45 = vector.broadcast %cst_22 : f32 to vector<8x384xf32>
    %46 = arith.addf %45, %44 : vector<8x384xf32>
    %47 = arith.divf %45, %46 : vector<8x384xf32>
    %48 = vector.extract_strided_slice %47 {offsets = [0, 0], sizes = [8, 128], strides = [1, 1]} : vector<8x384xf32> to vector<8x128xf32>
    %49 = vector.extract_strided_slice %47 {offsets = [0, 128], sizes = [8, 128], strides = [1, 1]} : vector<8x384xf32> to vector<8x128xf32>
    %50 = vector.extract_strided_slice %47 {offsets = [0, 256], sizes = [8, 128], strides = [1, 1]} : vector<8x384xf32> to vector<8x128xf32>
    %51 = vector.extract_strided_slice %41 {offsets = [0, 384], sizes = [8, 128], strides = [1, 1]} : vector<8x512xf32> to vector<8x128xf32>
    %52 = math.tanh %51 : vector<8x128xf32>
    %53 = arith.mulf %49, %30 : vector<8x128xf32>
    %54 = arith.mulf %48, %52 : vector<8x128xf32>
    %55 = arith.addf %53, %54 : vector<8x128xf32>
    %56 = math.tanh %55 : vector<8x128xf32>
    %57 = arith.mulf %50, %56 : vector<8x128xf32>
    %58 = arith.index_cast %c1_i32 : i32 to index
    %c0_23 = arith.constant 0 : index
    %c0_24 = arith.constant 0 : index
    %59 = vector.load %arg4[%58, %c0_23, %c0_24] : memref<8x8x128xf32, #tpu.memory_space<vmem>>, vector<1x8x128xf32>
    %60 = vector.shape_cast %59 : vector<1x8x128xf32> to vector<8x128xf32>
    %61 = vector.shape_cast %57 : vector<8x128xf32> to vector<1x8x128xf32>
    tpu.vector_store %arg4[%58, %c0_23, %c0_24], %61 {strides = array<i32>} : memref<8x8x128xf32, #tpu.memory_space<vmem>>, vector<1x8x128xf32>,
    %c2_i32 = arith.constant 2 : i32
    %62 = arith.index_cast %c2_i32 : i32 to index
    %c0_25 = arith.constant 0 : index
    %c0_26 = arith.constant 0 : index
    %63 = vector.load %arg7[%62, %c0_25, %c0_26] : memref<8x8x512xf32, #tpu.memory_space<vmem>>, vector<1x8x512xf32>
    %64 = vector.shape_cast %63 : vector<1x8x512xf32> to vector<8x512xf32>
    %cst_27 = arith.constant dense<0.000000e+00> : vector<8x512xf32>
    %65 = tpu.matmul %57, %9, %cst_27 {dimension_numbers = #tpu.dot_dimension_numbers<[1], [0], [0], [1], [0, 0, 1, 1], [], []>} : vector<8x128xf32>, vector<128x512xf32>, vector<8x512xf32> -> vector<8x512xf32>
    %66 = arith.addf %64, %65 : vector<8x512xf32>
    %67 = vector.extract_strided_slice %66 {offsets = [0, 0], sizes = [8, 384], strides = [1, 1]} : vector<8x512xf32> to vector<8x384xf32>
    %68 = arith.negf %67 : vector<8x384xf32>
    %69 = math.exp %68 : vector<8x384xf32>
    %cst_28 = arith.constant 1.000000e+00 : f32
    %70 = vector.broadcast %cst_28 : f32 to vector<8x384xf32>
    %71 = arith.addf %70, %69 : vector<8x384xf32>
    %72 = arith.divf %70, %71 : vector<8x384xf32>
    %73 = vector.extract_strided_slice %72 {offsets = [0, 0], sizes = [8, 128], strides = [1, 1]} : vector<8x384xf32> to vector<8x128xf32>
    %74 = vector.extract_strided_slice %72 {offsets = [0, 128], sizes = [8, 128], strides = [1, 1]} : vector<8x384xf32> to vector<8x128xf32>
    %75 = vector.extract_strided_slice %72 {offsets = [0, 256], sizes = [8, 128], strides = [1, 1]} : vector<8x384xf32> to vector<8x128xf32>
    %76 = vector.extract_strided_slice %66 {offsets = [0, 384], sizes = [8, 128], strides = [1, 1]} : vector<8x512xf32> to vector<8x128xf32>
    %77 = math.tanh %76 : vector<8x128xf32>
    %78 = arith.mulf %74, %55 : vector<8x128xf32>
    %79 = arith.mulf %73, %77 : vector<8x128xf32>
    %80 = arith.addf %78, %79 : vector<8x128xf32>
    %81 = math.tanh %80 : vector<8x128xf32>
    %82 = arith.mulf %75, %81 : vector<8x128xf32>
    %83 = arith.index_cast %c2_i32 : i32 to index
    %c0_29 = arith.constant 0 : index
    %c0_30 = arith.constant 0 : index
    %84 = vector.load %arg4[%83, %c0_29, %c0_30] : memref<8x8x128xf32, #tpu.memory_space<vmem>>, vector<1x8x128xf32>
    %85 = vector.shape_cast %84 : vector<1x8x128xf32> to vector<8x128xf32>
    %86 = vector.shape_cast %82 : vector<8x128xf32> to vector<1x8x128xf32>
    tpu.vector_store %arg4[%83, %c0_29, %c0_30], %86 {strides = array<i32>} : memref<8x8x128xf32, #tpu.memory_space<vmem>>, vector<1x8x128xf32>,
    %c3_i32 = arith.constant 3 : i32
    %87 = arith.index_cast %c3_i32 : i32 to index
    %c0_31 = arith.constant 0 : index
    %c0_32 = arith.constant 0 : index
    %88 = vector.load %arg7[%87, %c0_31, %c0_32] : memref<8x8x512xf32, #tpu.memory_space<vmem>>, vector<1x8x512xf32>
    %89 = vector.shape_cast %88 : vector<1x8x512xf32> to vector<8x512xf32>
    %cst_33 = arith.constant dense<0.000000e+00> : vector<8x512xf32>
    %90 = tpu.matmul %82, %9, %cst_33 {dimension_numbers = #tpu.dot_dimension_numbers<[1], [0], [0], [1], [0, 0, 1, 1], [], []>} : vector<8x128xf32>, vector<128x512xf32>, vector<8x512xf32> -> vector<8x512xf32>
    %91 = arith.addf %89, %90 : vector<8x512xf32>
    %92 = vector.extract_strided_slice %91 {offsets = [0, 0], sizes = [8, 384], strides = [1, 1]} : vector<8x512xf32> to vector<8x384xf32>
    %93 = arith.negf %92 : vector<8x384xf32>
    %94 = math.exp %93 : vector<8x384xf32>
    %cst_34 = arith.constant 1.000000e+00 : f32
    %95 = vector.broadcast %cst_34 : f32 to vector<8x384xf32>
    %96 = arith.addf %95, %94 : vector<8x384xf32>
    %97 = arith.divf %95, %96 : vector<8x384xf32>
    %98 = vector.extract_strided_slice %97 {offsets = [0, 0], sizes = [8, 128], strides = [1, 1]} : vector<8x384xf32> to vector<8x128xf32>
    %99 = vector.extract_strided_slice %97 {offsets = [0, 128], sizes = [8, 128], strides = [1, 1]} : vector<8x384xf32> to vector<8x128xf32>
    %100 = vector.extract_strided_slice %97 {offsets = [0, 256], sizes = [8, 128], strides = [1, 1]} : vector<8x384xf32> to vector<8x128xf32>
    %101 = vector.extract_strided_slice %91 {offsets = [0, 384], sizes = [8, 128], strides = [1, 1]} : vector<8x512xf32> to vector<8x128xf32>
    %102 = math.tanh %101 : vector<8x128xf32>
    %103 = arith.mulf %99, %80 : vector<8x128xf32>
    %104 = arith.mulf %98, %102 : vector<8x128xf32>
    %105 = arith.addf %103, %104 : vector<8x128xf32>
    %106 = math.tanh %105 : vector<8x128xf32>
    %107 = arith.mulf %100, %106 : vector<8x128xf32>
    %108 = arith.index_cast %c3_i32 : i32 to index
    %c0_35 = arith.constant 0 : index
    %c0_36 = arith.constant 0 : index
    %109 = vector.load %arg4[%108, %c0_35, %c0_36] : memref<8x8x128xf32, #tpu.memory_space<vmem>>, vector<1x8x128xf32>
    %110 = vector.shape_cast %109 : vector<1x8x128xf32> to vector<8x128xf32>
    %111 = vector.shape_cast %107 : vector<8x128xf32> to vector<1x8x128xf32>
    tpu.vector_store %arg4[%108, %c0_35, %c0_36], %111 {strides = array<i32>} : memref<8x8x128xf32, #tpu.memory_space<vmem>>, vector<1x8x128xf32>,
    %c4_i32 = arith.constant 4 : i32
    %112 = arith.index_cast %c4_i32 : i32 to index
    %c0_37 = arith.constant 0 : index
    %c0_38 = arith.constant 0 : index
    %113 = vector.load %arg7[%112, %c0_37, %c0_38] : memref<8x8x512xf32, #tpu.memory_space<vmem>>, vector<1x8x512xf32>
    %114 = vector.shape_cast %113 : vector<1x8x512xf32> to vector<8x512xf32>
    %cst_39 = arith.constant dense<0.000000e+00> : vector<8x512xf32>
    %115 = tpu.matmul %107, %9, %cst_39 {dimension_numbers = #tpu.dot_dimension_numbers<[1], [0], [0], [1], [0, 0, 1, 1], [], []>} : vector<8x128xf32>, vector<128x512xf32>, vector<8x512xf32> -> vector<8x512xf32>
    %116 = arith.addf %114, %115 : vector<8x512xf32>
    %117 = vector.extract_strided_slice %116 {offsets = [0, 0], sizes = [8, 384], strides = [1, 1]} : vector<8x512xf32> to vector<8x384xf32>
    %118 = arith.negf %117 : vector<8x384xf32>
    %119 = math.exp %118 : vector<8x384xf32>
    %cst_40 = arith.constant 1.000000e+00 : f32
    %120 = vector.broadcast %cst_40 : f32 to vector<8x384xf32>
    %121 = arith.addf %120, %119 : vector<8x384xf32>
    %122 = arith.divf %120, %121 : vector<8x384xf32>
    %123 = vector.extract_strided_slice %122 {offsets = [0, 0], sizes = [8, 128], strides = [1, 1]} : vector<8x384xf32> to vector<8x128xf32>
    %124 = vector.extract_strided_slice %122 {offsets = [0, 128], sizes = [8, 128], strides = [1, 1]} : vector<8x384xf32> to vector<8x128xf32>
    %125 = vector.extract_strided_slice %122 {offsets = [0, 256], sizes = [8, 128], strides = [1, 1]} : vector<8x384xf32> to vector<8x128xf32>
    %126 = vector.extract_strided_slice %116 {offsets = [0, 384], sizes = [8, 128], strides = [1, 1]} : vector<8x512xf32> to vector<8x128xf32>
    %127 = math.tanh %126 : vector<8x128xf32>
    %128 = arith.mulf %124, %105 : vector<8x128xf32>
    %129 = arith.mulf %123, %127 : vector<8x128xf32>
    %130 = arith.addf %128, %129 : vector<8x128xf32>
    %131 = math.tanh %130 : vector<8x128xf32>
    %132 = arith.mulf %125, %131 : vector<8x128xf32>
    %133 = arith.index_cast %c4_i32 : i32 to index
    %c0_41 = arith.constant 0 : index
    %c0_42 = arith.constant 0 : index
    %134 = vector.load %arg4[%133, %c0_41, %c0_42] : memref<8x8x128xf32, #tpu.memory_space<vmem>>, vector<1x8x128xf32>
    %135 = vector.shape_cast %134 : vector<1x8x128xf32> to vector<8x128xf32>
    %136 = vector.shape_cast %132 : vector<8x128xf32> to vector<1x8x128xf32>
    tpu.vector_store %arg4[%133, %c0_41, %c0_42], %136 {strides = array<i32>} : memref<8x8x128xf32, #tpu.memory_space<vmem>>, vector<1x8x128xf32>,
    %c5_i32 = arith.constant 5 : i32
    %137 = arith.index_cast %c5_i32 : i32 to index
    %c0_43 = arith.constant 0 : index
    %c0_44 = arith.constant 0 : index
    %138 = vector.load %arg7[%137, %c0_43, %c0_44] : memref<8x8x512xf32, #tpu.memory_space<vmem>>, vector<1x8x512xf32>
    %139 = vector.shape_cast %138 : vector<1x8x512xf32> to vector<8x512xf32>
    %cst_45 = arith.constant dense<0.000000e+00> : vector<8x512xf32>
    %140 = tpu.matmul %132, %9, %cst_45 {dimension_numbers = #tpu.dot_dimension_numbers<[1], [0], [0], [1], [0, 0, 1, 1], [], []>} : vector<8x128xf32>, vector<128x512xf32>, vector<8x512xf32> -> vector<8x512xf32>
    %141 = arith.addf %139, %140 : vector<8x512xf32>
    %142 = vector.extract_strided_slice %141 {offsets = [0, 0], sizes = [8, 384], strides = [1, 1]} : vector<8x512xf32> to vector<8x384xf32>
    %143 = arith.negf %142 : vector<8x384xf32>
    %144 = math.exp %143 : vector<8x384xf32>
    %cst_46 = arith.constant 1.000000e+00 : f32
    %145 = vector.broadcast %cst_46 : f32 to vector<8x384xf32>
    %146 = arith.addf %145, %144 : vector<8x384xf32>
    %147 = arith.divf %145, %146 : vector<8x384xf32>
    %148 = vector.extract_strided_slice %147 {offsets = [0, 0], sizes = [8, 128], strides = [1, 1]} : vector<8x384xf32> to vector<8x128xf32>
    %149 = vector.extract_strided_slice %147 {offsets = [0, 128], sizes = [8, 128], strides = [1, 1]} : vector<8x384xf32> to vector<8x128xf32>
    %150 = vector.extract_strided_slice %147 {offsets = [0, 256], sizes = [8, 128], strides = [1, 1]} : vector<8x384xf32> to vector<8x128xf32>
    %151 = vector.extract_strided_slice %141 {offsets = [0, 384], sizes = [8, 128], strides = [1, 1]} : vector<8x512xf32> to vector<8x128xf32>
    %152 = math.tanh %151 : vector<8x128xf32>
    %153 = arith.mulf %149, %130 : vector<8x128xf32>
    %154 = arith.mulf %148, %152 : vector<8x128xf32>
    %155 = arith.addf %153, %154 : vector<8x128xf32>
    %156 = math.tanh %155 : vector<8x128xf32>
    %157 = arith.mulf %150, %156 : vector<8x128xf32>
    %158 = arith.index_cast %c5_i32 : i32 to index
    %c0_47 = arith.constant 0 : index
    %c0_48 = arith.constant 0 : index
    %159 = vector.load %arg4[%158, %c0_47, %c0_48] : memref<8x8x128xf32, #tpu.memory_space<vmem>>, vector<1x8x128xf32>
    %160 = vector.shape_cast %159 : vector<1x8x128xf32> to vector<8x128xf32>
    %161 = vector.shape_cast %157 : vector<8x128xf32> to vector<1x8x128xf32>
    tpu.vector_store %arg4[%158, %c0_47, %c0_48], %161 {strides = array<i32>} : memref<8x8x128xf32, #tpu.memory_space<vmem>>, vector<1x8x128xf32>,
    %c6_i32 = arith.constant 6 : i32
    %162 = arith.index_cast %c6_i32 : i32 to index
    %c0_49 = arith.constant 0 : index
    %c0_50 = arith.constant 0 : index
    %163 = vector.load %arg7[%162, %c0_49, %c0_50] : memref<8x8x512xf32, #tpu.memory_space<vmem>>, vector<1x8x512xf32>
    %164 = vector.shape_cast %163 : vector<1x8x512xf32> to vector<8x512xf32>
    %cst_51 = arith.constant dense<0.000000e+00> : vector<8x512xf32>
    %165 = tpu.matmul %157, %9, %cst_51 {dimension_numbers = #tpu.dot_dimension_numbers<[1], [0], [0], [1], [0, 0, 1, 1], [], []>} : vector<8x128xf32>, vector<128x512xf32>, vector<8x512xf32> -> vector<8x512xf32>
    %166 = arith.addf %164, %165 : vector<8x512xf32>
    %167 = vector.extract_strided_slice %166 {offsets = [0, 0], sizes = [8, 384], strides = [1, 1]} : vector<8x512xf32> to vector<8x384xf32>
    %168 = arith.negf %167 : vector<8x384xf32>
    %169 = math.exp %168 : vector<8x384xf32>
    %cst_52 = arith.constant 1.000000e+00 : f32
    %170 = vector.broadcast %cst_52 : f32 to vector<8x384xf32>
    %171 = arith.addf %170, %169 : vector<8x384xf32>
    %172 = arith.divf %170, %171 : vector<8x384xf32>
    %173 = vector.extract_strided_slice %172 {offsets = [0, 0], sizes = [8, 128], strides = [1, 1]} : vector<8x384xf32> to vector<8x128xf32>
    %174 = vector.extract_strided_slice %172 {offsets = [0, 128], sizes = [8, 128], strides = [1, 1]} : vector<8x384xf32> to vector<8x128xf32>
    %175 = vector.extract_strided_slice %172 {offsets = [0, 256], sizes = [8, 128], strides = [1, 1]} : vector<8x384xf32> to vector<8x128xf32>
    %176 = vector.extract_strided_slice %166 {offsets = [0, 384], sizes = [8, 128], strides = [1, 1]} : vector<8x512xf32> to vector<8x128xf32>
    %177 = math.tanh %176 : vector<8x128xf32>
    %178 = arith.mulf %174, %155 : vector<8x128xf32>
    %179 = arith.mulf %173, %177 : vector<8x128xf32>
    %180 = arith.addf %178, %179 : vector<8x128xf32>
    %181 = math.tanh %180 : vector<8x128xf32>
    %182 = arith.mulf %175, %181 : vector<8x128xf32>
    %183 = arith.index_cast %c6_i32 : i32 to index
    %c0_53 = arith.constant 0 : index
    %c0_54 = arith.constant 0 : index
    %184 = vector.load %arg4[%183, %c0_53, %c0_54] : memref<8x8x128xf32, #tpu.memory_space<vmem>>, vector<1x8x128xf32>
    %185 = vector.shape_cast %184 : vector<1x8x128xf32> to vector<8x128xf32>
    %186 = vector.shape_cast %182 : vector<8x128xf32> to vector<1x8x128xf32>
    tpu.vector_store %arg4[%183, %c0_53, %c0_54], %186 {strides = array<i32>} : memref<8x8x128xf32, #tpu.memory_space<vmem>>, vector<1x8x128xf32>,
    %c7_i32 = arith.constant 7 : i32
    %187 = arith.index_cast %c7_i32 : i32 to index
    %c0_55 = arith.constant 0 : index
    %c0_56 = arith.constant 0 : index
    %188 = vector.load %arg7[%187, %c0_55, %c0_56] : memref<8x8x512xf32, #tpu.memory_space<vmem>>, vector<1x8x512xf32>
    %189 = vector.shape_cast %188 : vector<1x8x512xf32> to vector<8x512xf32>
    %cst_57 = arith.constant dense<0.000000e+00> : vector<8x512xf32>
    %190 = tpu.matmul %182, %9, %cst_57 {dimension_numbers = #tpu.dot_dimension_numbers<[1], [0], [0], [1], [0, 0, 1, 1], [], []>} : vector<8x128xf32>, vector<128x512xf32>, vector<8x512xf32> -> vector<8x512xf32>
    %191 = arith.addf %189, %190 : vector<8x512xf32>
    %192 = vector.extract_strided_slice %191 {offsets = [0, 0], sizes = [8, 384], strides = [1, 1]} : vector<8x512xf32> to vector<8x384xf32>
    %193 = arith.negf %192 : vector<8x384xf32>
    %194 = math.exp %193 : vector<8x384xf32>
    %cst_58 = arith.constant 1.000000e+00 : f32
    %195 = vector.broadcast %cst_58 : f32 to vector<8x384xf32>
    %196 = arith.addf %195, %194 : vector<8x384xf32>
    %197 = arith.divf %195, %196 : vector<8x384xf32>
    %198 = vector.extract_strided_slice %197 {offsets = [0, 0], sizes = [8, 128], strides = [1, 1]} : vector<8x384xf32> to vector<8x128xf32>
    %199 = vector.extract_strided_slice %197 {offsets = [0, 128], sizes = [8, 128], strides = [1, 1]} : vector<8x384xf32> to vector<8x128xf32>
    %200 = vector.extract_strided_slice %197 {offsets = [0, 256], sizes = [8, 128], strides = [1, 1]} : vector<8x384xf32> to vector<8x128xf32>
    %201 = vector.extract_strided_slice %191 {offsets = [0, 384], sizes = [8, 128], strides = [1, 1]} : vector<8x512xf32> to vector<8x128xf32>
    %202 = math.tanh %201 : vector<8x128xf32>
    %203 = arith.mulf %199, %180 : vector<8x128xf32>
    %204 = arith.mulf %198, %202 : vector<8x128xf32>
    %205 = arith.addf %203, %204 : vector<8x128xf32>
    %206 = math.tanh %205 : vector<8x128xf32>
    %207 = arith.mulf %200, %206 : vector<8x128xf32>
    %208 = arith.index_cast %c7_i32 : i32 to index
    %c0_59 = arith.constant 0 : index
    %c0_60 = arith.constant 0 : index
    %209 = vector.load %arg4[%208, %c0_59, %c0_60] : memref<8x8x128xf32, #tpu.memory_space<vmem>>, vector<1x8x128xf32>
    %210 = vector.shape_cast %209 : vector<1x8x128xf32> to vector<8x128xf32>
    %211 = vector.shape_cast %207 : vector<8x128xf32> to vector<1x8x128xf32>
    tpu.vector_store %arg4[%208, %c0_59, %c0_60], %211 {strides = array<i32>} : memref<8x8x128xf32, #tpu.memory_space<vmem>>, vector<1x8x128xf32>,
    %c8_i32 = arith.constant 8 : i32
    %c0_61 = arith.constant 0 : index
    %c0_62 = arith.constant 0 : index
    %212 = vector.load %arg5[%c0_61, %c0_62] : memref<8x128xf32, #tpu.memory_space<vmem>>, vector<8x128xf32>
    tpu.vector_store %arg5[%c0_61, %c0_62], %207 {strides = array<i32>} : memref<8x128xf32, #tpu.memory_space<vmem>>, vector<8x128xf32>,
    %c0_63 = arith.constant 0 : index
    %c0_64 = arith.constant 0 : index
    %213 = vector.load %arg6[%c0_63, %c0_64] : memref<8x128xf32, #tpu.memory_space<vmem>>, vector<8x128xf32>
    tpu.vector_store %arg6[%c0_63, %c0_64], %205 {strides = array<i32>} : memref<8x128xf32, #tpu.memory_space<vmem>>, vector<8x128xf32>,
    return
  }
}

</mosaic_0001>

<bundles_post_ra>
// kernel: tpu_custom_call.1
= control target key start
LH: loop header
LB: loop body
LE: loop exit
PB: predicated region body
PF: predicated region fallthrough
CT: control target
= control target key end

     0   :  { %12 = vsyncpa [#allocation4], 0  ;;  %s3095_s0 = inlined_call_operand.hbm [shape: f32[8,8,128], index: 0, kind: input, shape index: {}]   ;;  %s3096_s1 = inlined_call_operand.hbm [shape: f32[128,512], index: 1, kind: input, shape index: {}]   ;;  %s3097_s2 = inlined_call_operand.hbm [shape: f32[128,512], index: 2, kind: input, shape index: {}]   ;;  %s3098_s3 = inlined_call_operand.hbm [shape: f32[1,512], index: 3, kind: input, shape index: {}]   ;;  %s3099_s4 = inlined_call_operand.hbm [shape: f32[8,8,128], index: 4, kind: output, shape index: {0}]   ;;  %s3100_s5 = inlined_call_operand.hbm [shape: f32[8,128], index: 5, kind: output, shape index: {1}]   ;;  %s3101_s6 = inlined_call_operand.hbm [shape: f32[8,128], index: 6, kind: output, shape index: {2}]  }
   0x1   :  { %13 = vsyncpa [#allocation7], 0 }
   0x2   :  { %14 = vsyncpa [#allocation10], 0 }
   0x3   :  { %15 = vsyncpa [#allocation5], 0  ;;  %s34_s23 = sshll.u32 %s3096_s1, 4  ;;  %s35_s23 = int_to_ptr.hbm [resolvable:$true] %s34_s23 }
   0x4   :  { %16 = vsyncpa [#allocation13], 0  ;;  %s2115_s24 = smov [#allocation6]   ;;  %s21_s28 = sshll.u32 %s3095_s0, 4  ;;  %s22_s28 = int_to_ptr.hbm [resolvable:$true] %s21_s28 }
   0x5   :  { %s36_s25 = sshll.u32 %s2115_s24, 4  ;;  %s2116_s29 = smov 512   ;;  %s37_s25 = int_to_ptr.vmem [resolvable:$true] %s36_s25 }
   0x6   :  { %s2117_s30 = smov 32   ;;  %s2118_s7 = smov [#allocation3]  }
   0x7   :  { %42 = dma.hbm_to_vmem [thread:$0]  %s35_s23, 8192, %s37_s25, [#allocation7], %s2116_s29, %s2116_s29, %s2117_s30  }
   0x8   :  { %s23_s8 = sshll.u32 %s2118_s7, 4  ;;  %s2119_s9 = smov 128   ;;  %s24_s8 = int_to_ptr.vmem [resolvable:$true] %s23_s8 }
   0x9   :  { %s2120_s10 = smov 8   ;;  %s47_s12 = sshll.u32 %s3097_s2, 4  ;;  %s48_s12 = int_to_ptr.hbm [resolvable:$true] %s47_s12 }
   0xa   :  { %29 = dma.hbm_to_vmem [thread:$0]  %s22_s28, 1024, %s24_s8, [#allocation4], %s2119_s9, %s2119_s9, %s2120_s10  }
   0xb   :  { %s2121_s13 = smov [#allocation8]   ;;  %s61_s16 = sshll.u32 %s3098_s3, 4  ;;  %s62_s16 = int_to_ptr.hbm [resolvable:$true] %s61_s16 }
   0xc   :  { %s49_s0 = sshll.u32 %s2121_s13, 4  ;;  %s2122_s17 = smov [#allocation9]   ;;  %s50_s0 = int_to_ptr.vmem [resolvable:$true] %s49_s0 }
   0xd   :  { %55 = dma.hbm_to_vmem [thread:$0]  %s48_s12, 8192, %s50_s0, [#allocation7], %s2116_s29, %s2116_s29, %s2117_s30  }
   0xe   :  { %s63_s18 = sshll.u32 %s2122_s17, 4  ;;  %s64_s18 = int_to_ptr.vmem [resolvable:$true] %s63_s18 }
   0xf   :  { %66 = dma.hbm_to_vmem [thread:$0]  %s62_s16, 64, %s64_s18, [#allocation10]  }
  0x10   :  { %2105 = dma.done.wait [#allocation4], 1024  }
  0x11   :  { %2106 = vsyncadd [#allocation4], 4294966272 }
  0x12   :  { %2107 = dma.done.wait [#allocation7], 16384  }
  0x13   :  { %2108 = vsyncadd [#allocation7], 4294950912 }
  0x14   :  { %2109 = dma.done.wait [#allocation10], 64  }
  0x15   :  { %2110 = vsyncadd [#allocation10], 4294967232  ;;  %v151_v0 = vld [vmem:[#allocation6 + $0x1e0] sm:$0xff]  ;;  %v152_v1 = vld [vmem:[#allocation6 + $0x1e8] sm:$0xff]  ;;  %s2124_s2 = smov [#allocation11]   ;;  %s1663_s21 = sshll.u32 %s3099_s4, 4  ;;  %s1664_s21 = int_to_ptr.hbm [resolvable:$true] %s1663_s21 }
  0x16   :  { %v153_v2 = vld [vmem:[#allocation6 + $0x1f0] sm:$0xff]  ;;  %165 = vmatpush.msra.mxu0 %v151_v0  ;;  %206 = vmatpush.msra.mxu1 %v152_v1  ;;  %v154_v3 = vld [vmem:[#allocation6 + $0x1f8] sm:$0xff]  ;;  %v147_v4 = vld [vmem:[#allocation6 + $0x1c0] sm:$0xff]  ;;  %s1661_s3 = sshll.u32 %s2124_s2, 4  ;;  %s2125_s22 = smov [#allocation12]   ;;  %s1662_s3 = int_to_ptr.vmem [resolvable:$true] %s1661_s3 }
  0x17   :  { %v148_v5 = vld [vmem:[#allocation6 + $0x1c8] sm:$0xff]  ;;  %247 = vmatpush.msra.mxu2 %v153_v2  ;;  %288 = vmatpush.msra.mxu3 %v154_v3  ;;  %v149_v6 = vld [vmem:[#allocation6 + $0x1d0] sm:$0xff]  ;;  %v150_v7 = vld [vmem:[#allocation6 + $0x1d8] sm:$0xff]  ;;  %s1675_s23 = sshll.u32 %s2125_s22, 4  ;;  %s1677_s26 = sshll.u32 %s3100_s5, 4  ;;  %s1676_s23 = int_to_ptr.vmem [resolvable:$true] %s1675_s23  ;;  %s1678_s26 = int_to_ptr.hbm [resolvable:$true] %s1677_s26 }
  0x18   :  { %v143_v8 = vld [vmem:[#allocation6 + $0x1a0] sm:$0xff]  ;;  %166 = vmatpush.msra.mxu0 %v147_v4  ;;  %207 = vmatpush.msra.mxu1 %v148_v5  ;;  %v144_v9 = vld [vmem:[#allocation6 + $0x1a8] sm:$0xff]  ;;  %v145_v10 = vld [vmem:[#allocation6 + $0x1b0] sm:$0xff]  ;;  %s2126_s27 = smov [#allocation14]   ;;  %s1688_s7 = sshll.u32 %s3101_s6, 4  ;;  %s1689_s7 = int_to_ptr.hbm [resolvable:$true] %s1688_s7 }
  0x19   :  { %v146_v11 = vld [vmem:[#allocation6 + $0x1b8] sm:$0xff]  ;;  %248 = vmatpush.msra.mxu2 %v149_v6  ;;  %289 = vmatpush.msra.mxu3 %v150_v7  ;;  %v139_v12 = vld [vmem:[#allocation6 + $0x180] sm:$0xff]  ;;  %v140_v13 = vld [vmem:[#allocation6 + $0x188] sm:$0xff]  ;;  %s1686_s28 = sshll.u32 %s2126_s27, 4  ;;  %s1687_s28 = int_to_ptr.vmem [resolvable:$true] %s1686_s28 }
  0x1a   :  { %167 = vmatpush.msra.mxu0 %v143_v8  ;;  %208 = vmatpush.msra.mxu1 %v144_v9  ;;  %v141_v14 = vld [vmem:[#allocation6 + $0x190] sm:$0xff]  ;;  %v142_v15 = vld [vmem:[#allocation6 + $0x198] sm:$0xff]  ;;  %v135_v16 = vld [vmem:[#allocation6 + $0x160] sm:$0xff] }
  0x1b   :  { %249 = vmatpush.msra.mxu2 %v145_v10  ;;  %290 = vmatpush.msra.mxu3 %v146_v11  ;;  %v136_v17 = vld [vmem:[#allocation6 + $0x168] sm:$0xff]  ;;  %v137_v18 = vld [vmem:[#allocation6 + $0x170] sm:$0xff]  ;;  %v138_v19 = vld [vmem:[#allocation6 + $0x178] sm:$0xff] }
  0x1c   :  { %168 = vmatpush.msra.mxu0 %v139_v12  ;;  %209 = vmatpush.msra.mxu1 %v140_v13  ;;  %v131_v20 = vld [vmem:[#allocation6 + $0x140] sm:$0xff]  ;;  %v132_v21 = vld [vmem:[#allocation6 + $0x148] sm:$0xff]  ;;  %v133_v22 = vld [vmem:[#allocation6 + $0x150] sm:$0xff] }
  0x1d   :  { %250 = vmatpush.msra.mxu2 %v141_v14  ;;  %291 = vmatpush.msra.mxu3 %v142_v15  ;;  %v134_v23 = vld [vmem:[#allocation6 + $0x158] sm:$0xff]  ;;  %v127_v24 = vld [vmem:[#allocation6 + $0x120] sm:$0xff]  ;;  %v128_v25 = vld [vmem:[#allocation6 + $0x128] sm:$0xff] }
  0x1e   :  { %169 = vmatpush.msra.mxu0 %v135_v16  ;;  %210 = vmatpush.msra.mxu1 %v136_v17  ;;  %v129_v26 = vld [vmem:[#allocation6 + $0x130] sm:$0xff]  ;;  %v130_v27 = vld [vmem:[#allocation6 + $0x138] sm:$0xff]  ;;  %v123_v28 = vld [vmem:[#allocation6 + $0x100] sm:$0xff] }
  0x1f   :  { %251 = vmatpush.msra.mxu2 %v137_v18  ;;  %292 = vmatpush.msra.mxu3 %v138_v19  ;;  %v124_v29 = vld [vmem:[#allocation6 + $0x108] sm:$0xff]  ;;  %v125_v30 = vld [vmem:[#allocation6 + $0x110] sm:$0xff]  ;;  %v126_v31 = vld [vmem:[#allocation6 + $0x118] sm:$0xff] }
  0x20   :  { %170 = vmatpush.msra.mxu0 %v131_v20  ;;  %211 = vmatpush.msra.mxu1 %v132_v21  ;;  %v119_v32 = vld [vmem:[#allocation6 + $0xe0] sm:$0xff]  ;;  %v120_v33 = vld [vmem:[#allocation6 + $0xe8] sm:$0xff]  ;;  %v121_v34 = vld [vmem:[#allocation6 + $0xf0] sm:$0xff] }
  0x21   :  { %252 = vmatpush.msra.mxu2 %v133_v22  ;;  %293 = vmatpush.msra.mxu3 %v134_v23  ;;  %v122_v35 = vld [vmem:[#allocation6 + $0xf8] sm:$0xff]  ;;  %v115_v36 = vld [vmem:[#allocation6 + $0xc0] sm:$0xff]  ;;  %v116_v37 = vld [vmem:[#allocation6 + $0xc8] sm:$0xff] }
  0x22   :  { %171 = vmatpush.msra.mxu0 %v127_v24  ;;  %212 = vmatpush.msra.mxu1 %v128_v25  ;;  %v117_v38 = vld [vmem:[#allocation6 + $0xd0] sm:$0xff]  ;;  %v118_v39 = vld [vmem:[#allocation6 + $0xd8] sm:$0xff]  ;;  %v111_v40 = vld [vmem:[#allocation6 + $0xa0] sm:$0xff] }
  0x23   :  { %253 = vmatpush.msra.mxu2 %v129_v26  ;;  %294 = vmatpush.msra.mxu3 %v130_v27  ;;  %v112_v41 = vld [vmem:[#allocation6 + $0xa8] sm:$0xff]  ;;  %v113_v42 = vld [vmem:[#allocation6 + $0xb0] sm:$0xff]  ;;  %v114_v43 = vld [vmem:[#allocation6 + $0xb8] sm:$0xff] }
  0x24   :  { %172 = vmatpush.msra.mxu0 %v123_v28  ;;  %213 = vmatpush.msra.mxu1 %v124_v29  ;;  %v107_v44 = vld [vmem:[#allocation6 + $0x80] sm:$0xff]  ;;  %v108_v45 = vld [vmem:[#allocation6 + $0x88] sm:$0xff]  ;;  %v109_v46 = vld [vmem:[#allocation6 + $0x90] sm:$0xff] }
  0x25   :  { %254 = vmatpush.msra.mxu2 %v125_v30  ;;  %295 = vmatpush.msra.mxu3 %v126_v31  ;;  %v110_v47 = vld [vmem:[#allocation6 + $0x98] sm:$0xff]  ;;  %v103_v48 = vld [vmem:[#allocation6 + $0x60] sm:$0xff]  ;;  %v104_v49 = vld [vmem:[#allocation6 + $0x68] sm:$0xff] }
  0x26   :  { %173 = vmatpush.msra.mxu0 %v119_v32  ;;  %214 = vmatpush.msra.mxu1 %v120_v33  ;;  %v105_v50 = vld [vmem:[#allocation6 + $0x70] sm:$0xff]  ;;  %v106_v51 = vld [vmem:[#allocation6 + $0x78] sm:$0xff]  ;;  %v99_v52 = vld [vmem:[#allocation6 + $0x40] sm:$0xff] }
  0x27   :  { %255 = vmatpush.msra.mxu2 %v121_v34  ;;  %296 = vmatpush.msra.mxu3 %v122_v35  ;;  %v100_v53 = vld [vmem:[#allocation6 + $0x48] sm:$0xff]  ;;  %v101_v54 = vld [vmem:[#allocation6 + $0x50] sm:$0xff]  ;;  %v102_v55 = vld [vmem:[#allocation6 + $0x58] sm:$0xff] }
  0x28   :  { %174 = vmatpush.msra.mxu0 %v115_v36  ;;  %215 = vmatpush.msra.mxu1 %v116_v37  ;;  %v95_v56 = vld [vmem:[#allocation6 + $0x20] sm:$0xff]  ;;  %v96_v57 = vld [vmem:[#allocation6 + $0x28] sm:$0xff]  ;;  %v97_v58 = vld [vmem:[#allocation6 + $0x30] sm:$0xff] }
  0x29   :  { %256 = vmatpush.msra.mxu2 %v117_v38  ;;  %297 = vmatpush.msra.mxu3 %v118_v39  ;;  %v98_v59 = vld [vmem:[#allocation6 + $0x38] sm:$0xff]  ;;  %v91_v60 = vld [vmem:[#allocation6] sm:$0xff]  ;;  %v92_v61 = vld [vmem:[#allocation6 + $0x8] sm:$0xff] }
  0x2a   :  { %175 = vmatpush.msra.mxu0 %v111_v40  ;;  %216 = vmatpush.msra.mxu1 %v112_v41  ;;  %v93_v62 = vld [vmem:[#allocation6 + $0x10] sm:$0xff]  ;;  %v94_v63 = vld [vmem:[#allocation6 + $0x18] sm:$0xff]  ;;  %v83_v0 = vld [vmem:[#allocation3] sm:$0xff] }
  0x2b   :  { %257 = vmatpush.msra.mxu2 %v113_v42  ;;  %298 = vmatpush.msra.mxu3 %v114_v43  ;;  %v2177_v1 = vld [vmem:[#allocation8 + $0x1e0] sm:$0xff]  ;;  %v2179_v2 = vld [vmem:[#allocation8 + $0x1e8] sm:$0xff]  ;;  %v2181_v3 = vld [vmem:[#allocation8 + $0x1f0] sm:$0xff] }
  0x2c   :  { %176 = vmatpush.msra.mxu0 %v107_v44  ;;  %217 = vmatpush.msra.mxu1 %v108_v45  ;;  %v2183_v4 = vld [vmem:[#allocation8 + $0x1f8] sm:$0xff]  ;;  %v2185_v5 = vld [vmem:[#allocation8 + $0x1c0] sm:$0xff]  ;;  %v2187_v6 = vld [vmem:[#allocation8 + $0x1c8] sm:$0xff] }
  0x2d   :  { %258 = vmatpush.msra.mxu2 %v109_v46  ;;  %299 = vmatpush.msra.mxu3 %v110_v47  ;;  %v2191_v7 = vld [vmem:[#allocation8 + $0x1d0] sm:$0xff]  ;;  %v2193_v8 = vld [vmem:[#allocation8 + $0x1d8] sm:$0xff]  ;;  %v2196_v9 = vld [vmem:[#allocation8 + $0x1a0] sm:$0xff] }
  0x2e   :  { %177 = vmatpush.msra.mxu0 %v103_v48  ;;  %218 = vmatpush.msra.mxu1 %v104_v49  ;;  %v2198_v10 = vld [vmem:[#allocation8 + $0x1a8] sm:$0xff]  ;;  %v2203_v11 = vld [vmem:[#allocation8 + $0x1b0] sm:$0xff]  ;;  %v2205_v12 = vld [vmem:[#allocation8 + $0x1b8] sm:$0xff] }
  0x2f   :  { %259 = vmatpush.msra.mxu2 %v105_v50  ;;  %300 = vmatpush.msra.mxu3 %v106_v51  ;;  %v84_v13 = vld [vmem:[#allocation3 + $0x8] sm:$0xff]  ;;  %v2211_v14 = vld [vmem:[#allocation8 + $0x180] sm:$0xff]  ;;  %v2217_v16 = vld [vmem:[#allocation8 + $0x190] sm:$0xff] }
  0x30   :  { %178 = vmatpush.msra.mxu0 %v99_v52  ;;  %219 = vmatpush.msra.mxu1 %v100_v53  ;;  %v2213_v15 = vld [vmem:[#allocation8 + $0x188] sm:$0xff]  ;;  %v2219_v17 = vld [vmem:[#allocation8 + $0x198] sm:$0xff]  ;;  %v2221_v18 = vld [vmem:[#allocation8 + $0x160] sm:$0xff] }
  0x31   :  { %260 = vmatpush.msra.mxu2 %v101_v54  ;;  %301 = vmatpush.msra.mxu3 %v102_v55  ;;  %v2223_v19 = vld [vmem:[#allocation8 + $0x168] sm:$0xff]  ;;  %v2227_v20 = vld [vmem:[#allocation8 + $0x170] sm:$0xff]  ;;  %v2229_v21 = vld [vmem:[#allocation8 + $0x178] sm:$0xff] }
  0x32   :  { %179 = vmatpush.msra.mxu0 %v95_v56  ;;  %220 = vmatpush.msra.mxu1 %v96_v57  ;;  %v2232_v22 = vld [vmem:[#allocation8 + $0x140] sm:$0xff]  ;;  %v2234_v23 = vld [vmem:[#allocation8 + $0x148] sm:$0xff]  ;;  %v2239_v24 = vld [vmem:[#allocation8 + $0x150] sm:$0xff] }
  0x33   :  { %261 = vmatpush.msra.mxu2 %v97_v58  ;;  %302 = vmatpush.msra.mxu3 %v98_v59  ;;  %v2241_v25 = vld [vmem:[#allocation8 + $0x158] sm:$0xff]  ;;  %v85_v26 = vld [vmem:[#allocation3 + $0x10] sm:$0xff]  ;;  %v2247_v27 = vld [vmem:[#allocation8 + $0x120] sm:$0xff] }
  0x34   :  { %180 = vmatpush.msra.mxu0 %v91_v60  ;;  %221 = vmatpush.msra.mxu1 %v92_v61  ;;  %v2249_v28 = vld [vmem:[#allocation8 + $0x128] sm:$0xff]  ;;  %v2253_v29 = vld [vmem:[#allocation8 + $0x130] sm:$0xff]  ;;  %v2255_v30 = vld [vmem:[#allocation8 + $0x138] sm:$0xff] }
  0x35   :  { %262 = vmatpush.msra.mxu2 %v93_v62  ;;  %303 = vmatpush.msra.mxu3 %v94_v63  ;;  %v2257_v31 = vld [vmem:[#allocation8 + $0x100] sm:$0xff]  ;;  %v2259_v32 = vld [vmem:[#allocation8 + $0x108] sm:$0xff]  ;;  %v2263_v33 = vld [vmem:[#allocation8 + $0x110] sm:$0xff] }
  0x36   :  { %181 = vmatmul.f32.vlgmr.msra.gmra.mxu0 %v83_v0  ;;  %222 = vmatmul.f32.vlgmr.msra.gmra.mxu1 %v83_v0  ;;  %v2265_v34 = vld [vmem:[#allocation8 + $0x118] sm:$0xff]  ;;  %v2268_v35 = vld [vmem:[#allocation8 + $0xe0] sm:$0xff]  ;;  %v2270_v36 = vld [vmem:[#allocation8 + $0xe8] sm:$0xff] }
  0x37   :  { %263 = vmatmul.f32.vlgmr.msra.gmra.mxu2 %v83_v0  ;;  %304 = vmatmul.f32.vlgmr.msra.gmra.mxu3 %v83_v0  ;;  %v2275_v37 = vld [vmem:[#allocation8 + $0xf0] sm:$0xff]  ;;  %v2277_v38 = vld [vmem:[#allocation8 + $0xf8] sm:$0xff]  ;;  %v2283_v40 = vld [vmem:[#allocation8 + $0xc0] sm:$0xff] }
  0x38   :  { %429 = vmatpush.msrb.mxu0 %v2177_v1  ;;  %449 = vmatpush.msrb.mxu1 %v2179_v2  ;;  %v86_v39 = vld [vmem:[#allocation3 + $0x18] sm:$0xff]  ;;  %v2285_v41 = vld [vmem:[#allocation8 + $0xc8] sm:$0xff]  ;;  %v2289_v42 = vld [vmem:[#allocation8 + $0xd0] sm:$0xff] }
  0x39   :  { %469 = vmatpush.msrb.mxu2 %v2181_v3  ;;  %489 = vmatpush.msrb.mxu3 %v2183_v4  ;;  %3189 = vst [vmem:[#allocation20_spill] sm:$0xff] %v2289_v42  ;;  %v2291_v43 = vld [vmem:[#allocation8 + $0xd8] sm:$0xff]  ;;  %v2293_v44 = vld [vmem:[#allocation8 + $0xa0] sm:$0xff]  ;;  %v2295_v45 = vld [vmem:[#allocation8 + $0xa8] sm:$0xff] }
  0x3a   :  { %430 = vmatpush.msrb.mxu0 %v2185_v5  ;;  %450 = vmatpush.msrb.mxu1 %v2187_v6  ;;  %3190 = vst [vmem:[#allocation21_spill] sm:$0xff] %v2291_v43  ;;  %v2299_v46 = vld [vmem:[#allocation8 + $0xb0] sm:$0xff]  ;;  %v2301_v47 = vld [vmem:[#allocation8 + $0xb8] sm:$0xff]  ;;  %v2304_v48 = vld [vmem:[#allocation8 + $0x80] sm:$0xff] }
  0x3b   :  { %470 = vmatpush.msrb.mxu2 %v2191_v7  ;;  %490 = vmatpush.msrb.mxu3 %v2193_v8  ;;  %3191 = vst [vmem:[#allocation22_spill] sm:$0xff] %v2293_v44  ;;  %v2306_v49 = vld [vmem:[#allocation8 + $0x88] sm:$0xff]  ;;  %v2311_v50 = vld [vmem:[#allocation8 + $0x90] sm:$0xff]  ;;  %v2313_v51 = vld [vmem:[#allocation8 + $0x98] sm:$0xff] }
  0x3c   :  { %431 = vmatpush.msrb.mxu0 %v2196_v9  ;;  %451 = vmatpush.msrb.mxu1 %v2198_v10  ;;  %3192 = vst [vmem:[#allocation23_spill] sm:$0xff] %v2295_v45  ;;  %v87_v52 = vld [vmem:[#allocation3 + $0x20] sm:$0xff]  ;;  %v2321_v54 = vld [vmem:[#allocation8 + $0x68] sm:$0xff]  ;;  %v2325_v55 = vld [vmem:[#allocation8 + $0x70] sm:$0xff] }
  0x3d   :  { %471 = vmatpush.msrb.mxu2 %v2203_v11  ;;  %491 = vmatpush.msrb.mxu3 %v2205_v12  ;;  %3193 = vst [vmem:[#allocation24_spill] sm:$0xff] %v2299_v46  ;;  %v2319_v53 = vld [vmem:[#allocation8 + $0x60] sm:$0xff]  ;;  %v2327_v56 = vld [vmem:[#allocation8 + $0x78] sm:$0xff]  ;;  %v2331_v58 = vld [vmem:[#allocation8 + $0x48] sm:$0xff] }
  0x3e   :  { %184 = vmatmul.f32.gmra.mxu0 %v84_v13  ;;  %225 = vmatmul.f32.gmra.mxu1 %v84_v13  ;;  %3194 = vst [vmem:[#allocation25_spill] sm:$0xff] %v2301_v47  ;;  %v2329_v57 = vld [vmem:[#allocation8 + $0x40] sm:$0xff]  ;;  %v2335_v59 = vld [vmem:[#allocation8 + $0x50] sm:$0xff]  ;;  %v2337_v60 = vld [vmem:[#allocation8 + $0x58] sm:$0xff] }
  0x3f   :  { %266 = vmatmul.f32.gmra.mxu2 %v84_v13  ;;  %307 = vmatmul.f32.gmra.mxu3 %v84_v13  ;;  %3195 = vst [vmem:[#allocation26_spill] sm:$0xff] %v2304_v48  ;;  %v2340_v61 = vld [vmem:[#allocation8 + $0x20] sm:$0xff]  ;;  %v2342_v62 = vld [vmem:[#allocation8 + $0x28] sm:$0xff]  ;;  %v2347_v63 = vld [vmem:[#allocation8 + $0x30] sm:$0xff] }
  0x40   :  { %432 = vmatpush.msrb.mxu0 %v2211_v14  ;;  %452 = vmatpush.msrb.mxu1 %v2213_v15  ;;  %3196 = vst [vmem:[#allocation27_spill] sm:$0xff] %v2306_v49  ;;  %v2349_v0 = vld [vmem:[#allocation8 + $0x38] sm:$0xff]  ;;  %v88_v13 = vld [vmem:[#allocation3 + $0x28] sm:$0xff] }
  0x41   :  { %472 = vmatpush.msrb.mxu2 %v2217_v16  ;;  %492 = vmatpush.msrb.mxu3 %v2219_v17  ;;  %3197 = vst [vmem:[#allocation28_spill] sm:$0xff] %v2311_v50 }
  0x42   :  { %433 = vmatpush.msrb.mxu0 %v2221_v18  ;;  %453 = vmatpush.msrb.mxu1 %v2223_v19  ;;  %3198 = vst [vmem:[#allocation29_spill] sm:$0xff] %v2313_v51 }
  0x43   :  { %473 = vmatpush.msrb.mxu2 %v2227_v20  ;;  %493 = vmatpush.msrb.mxu3 %v2229_v21  ;;  %3199 = vst [vmem:[#allocation30_spill] sm:$0xff] %v2319_v53 }
  0x44   :  { %434 = vmatpush.msrb.mxu0 %v2232_v22  ;;  %454 = vmatpush.msrb.mxu1 %v2234_v23  ;;  %3200 = vst [vmem:[#allocation31_spill] sm:$0xff] %v2321_v54 }
  0x45   :  { %474 = vmatpush.msrb.mxu2 %v2239_v24  ;;  %494 = vmatpush.msrb.mxu3 %v2241_v25  ;;  %3201 = vst [vmem:[#allocation32_spill] sm:$0xff] %v2325_v55 }
  0x46   :  { %187 = vmatmul.f32.gmra.mxu0 %v85_v26  ;;  %228 = vmatmul.f32.gmra.mxu1 %v85_v26  ;;  %3202 = vst [vmem:[#allocation33_spill] sm:$0xff] %v2327_v56 }
  0x47   :  { %269 = vmatmul.f32.gmra.mxu2 %v85_v26  ;;  %310 = vmatmul.f32.gmra.mxu3 %v85_v26  ;;  %3203 = vst [vmem:[#allocation34_spill] sm:$0xff] %v2329_v57  ;;  %v2355_v26 = vld [vmem:[#allocation8] sm:$0xff] }
  0x48   :  { %435 = vmatpush.msrb.mxu0 %v2247_v27  ;;  %455 = vmatpush.msrb.mxu1 %v2249_v28  ;;  %3204 = vst [vmem:[#allocation35_spill] sm:$0xff] %v2331_v58 }
  0x49   :  { %475 = vmatpush.msrb.mxu2 %v2253_v29  ;;  %495 = vmatpush.msrb.mxu3 %v2255_v30  ;;  %3205 = vst [vmem:[#allocation36_spill] sm:$0xff] %v2335_v59 }
  0x4a   :  { %436 = vmatpush.msrb.mxu0 %v2257_v31  ;;  %456 = vmatpush.msrb.mxu1 %v2259_v32  ;;  %3206 = vst [vmem:[#allocation37_spill] sm:$0xff] %v2337_v60 }
  0x4b   :  { %476 = vmatpush.msrb.mxu2 %v2263_v33  ;;  %496 = vmatpush.msrb.mxu3 %v2265_v34  ;;  %3207 = vst [vmem:[#allocation38_spill] sm:$0xff] %v2340_v61 }
  0x4c   :  { %437 = vmatpush.msrb.mxu0 %v2268_v35  ;;  %457 = vmatpush.msrb.mxu1 %v2270_v36  ;;  %3208 = vst [vmem:[#allocation39_spill] sm:$0xff] %v2342_v62 }
  0x4d   :  { %477 = vmatpush.msrb.mxu2 %v2275_v37  ;;  %497 = vmatpush.msrb.mxu3 %v2277_v38  ;;  %3209 = vst [vmem:[#allocation40_spill] sm:$0xff] %v2347_v63 }
  0x4e   :  { %190 = vmatmul.f32.gmra.mxu0 %v86_v39  ;;  %231 = vmatmul.f32.gmra.mxu1 %v86_v39  ;;  %3210 = vst [vmem:[#allocation41_spill] sm:$0xff] %v2349_v0 }
  0x4f   :  { %272 = vmatmul.f32.gmra.mxu2 %v86_v39  ;;  %313 = vmatmul.f32.gmra.mxu3 %v86_v39  ;;  %3211 = vst [vmem:[#allocation42_spill] sm:$0xff] %v2355_v26  ;;  %v2357_v39 = vld [vmem:[#allocation8 + $0x8] sm:$0xff] }
  0x50   :  { %438 = vmatpush.msrb.mxu0 %v2283_v40  ;;  %458 = vmatpush.msrb.mxu1 %v2285_v41  ;;  %3212 = vst [vmem:[#allocation43_spill] sm:$0xff] %v2357_v39 }
  0x51   :  { %478 = vmatpush.msrb.mxu2 %v2289_v42  ;;  %498 = vmatpush.msrb.mxu3 %v2291_v43 }
  0x52   :  { %439 = vmatpush.msrb.mxu0 %v2293_v44  ;;  %459 = vmatpush.msrb.mxu1 %v2295_v45 }
  0x53   :  { %479 = vmatpush.msrb.mxu2 %v2299_v46  ;;  %499 = vmatpush.msrb.mxu3 %v2301_v47 }
  0x54   :  { %440 = vmatpush.msrb.mxu0 %v2304_v48  ;;  %460 = vmatpush.msrb.mxu1 %v2306_v49 }
  0x55   :  { %480 = vmatpush.msrb.mxu2 %v2311_v50  ;;  %500 = vmatpush.msrb.mxu3 %v2313_v51 }
  0x56   :  { %193 = vmatmul.f32.gmra.mxu0 %v87_v52  ;;  %234 = vmatmul.f32.gmra.mxu1 %v87_v52 }
  0x57   :  { %275 = vmatmul.f32.gmra.mxu2 %v87_v52  ;;  %316 = vmatmul.f32.gmra.mxu3 %v87_v52  ;;  %v2361_v52 = vld [vmem:[#allocation8 + $0x10] sm:$0xff] }
  0x58   :  { %441 = vmatpush.msrb.mxu0 %v2319_v53  ;;  %461 = vmatpush.msrb.mxu1 %v2321_v54  ;;  %3213 = vst [vmem:[#allocation44_spill] sm:$0xff] %v2361_v52 }
  0x59   :  { %481 = vmatpush.msrb.mxu2 %v2325_v55  ;;  %501 = vmatpush.msrb.mxu3 %v2327_v56 }
  0x5a   :  { %442 = vmatpush.msrb.mxu0 %v2329_v57  ;;  %462 = vmatpush.msrb.mxu1 %v2331_v58  ;;  %v2363_v58 = vld [vmem:[#allocation8 + $0x18] sm:$0xff] }
  0x5b   :  { %482 = vmatpush.msrb.mxu2 %v2335_v59  ;;  %502 = vmatpush.msrb.mxu3 %v2337_v60  ;;  %3214 = vst [vmem:[#allocation45_spill] sm:$0xff] %v2363_v58 }
  0x5c   :  { %443 = vmatpush.msrb.mxu0 %v2340_v61  ;;  %463 = vmatpush.msrb.mxu1 %v2342_v62 }
  0x5d   :  { %483 = vmatpush.msrb.mxu2 %v2347_v63  ;;  %503 = vmatpush.msrb.mxu3 %v2349_v0  ;;  %v89_v0 = vld [vmem:[#allocation3 + $0x30] sm:$0xff] }
  0x5e   :  { %196 = vmatmul.f32.gmra.mxu0 %v88_v13  ;;  %237 = vmatmul.f32.gmra.mxu1 %v88_v13 }
  0x5f   :  { %278 = vmatmul.f32.gmra.mxu2 %v88_v13  ;;  %319 = vmatmul.f32.gmra.mxu3 %v88_v13  ;;  %v90_v13 = vld [vmem:[#allocation3 + $0x38] sm:$0xff] }
  0x60   :  { %444 = vmatpush.msrb.mxu0 %v2355_v26  ;;  %464 = vmatpush.msrb.mxu1 %v2357_v39 }
  0x61   :  { %484 = vmatpush.msrb.mxu2 %v2361_v52  ;;  %504 = vmatpush.msrb.mxu3 %v2363_v58 }
  0x62   :  { %582 = vmatpush.msra.mxu0 %v2177_v1  ;;  %602 = vmatpush.msra.mxu1 %v2179_v2 }
  0x63   :  { %622 = vmatpush.msra.mxu2 %v2181_v3  ;;  %642 = vmatpush.msra.mxu3 %v2183_v4 }
  0x64   :  { %583 = vmatpush.msra.mxu0 %v2185_v5  ;;  %603 = vmatpush.msra.mxu1 %v2187_v6 }
  0x65   :  { %623 = vmatpush.msra.mxu2 %v2191_v7  ;;  %643 = vmatpush.msra.mxu3 %v2193_v8 }
  0x66   :  { %199 = vmatmul.f32.gmra.mxu0 %v89_v0  ;;  %240 = vmatmul.f32.gmra.mxu1 %v89_v0 }
  0x67   :  { %281 = vmatmul.f32.gmra.mxu2 %v89_v0  ;;  %322 = vmatmul.f32.gmra.mxu3 %v89_v0  ;;  %v2123_v0 = vmov 0.0  }
  0x68   :  { %584 = vmatpush.msra.mxu0 %v2196_v9  ;;  %604 = vmatpush.msra.mxu1 %v2198_v10 }
  0x69   :  { %624 = vmatpush.msra.mxu2 %v2203_v11  ;;  %644 = vmatpush.msra.mxu3 %v2205_v12 }
  0x6a   :  { %585 = vmatpush.msra.mxu0 %v2211_v14  ;;  %605 = vmatpush.msra.mxu1 %v2213_v15 }
  0x6b   :  { %625 = vmatpush.msra.mxu2 %v2217_v16  ;;  %645 = vmatpush.msra.mxu3 %v2219_v17 }
  0x6c   :  { %586 = vmatpush.msra.mxu0 %v2221_v18  ;;  %606 = vmatpush.msra.mxu1 %v2223_v19 }
  0x6d   :  { %626 = vmatpush.msra.mxu2 %v2227_v20  ;;  %646 = vmatpush.msra.mxu3 %v2229_v21 }
  0x6e   :  { %202 = vmatmul.f32.gmra.mxu0 %v90_v13  ;;  %243 = vmatmul.f32.gmra.mxu1 %v90_v13 }
  0x6f   :  { %284 = vmatmul.f32.gmra.mxu2 %v90_v13  ;;  %325 = vmatmul.f32.gmra.mxu3 %v90_v13  ;;  %v3215_v13 = vld [vmem:[#allocation35_spill] sm:$0xff] }
  0x70   :  { %587 = vmatpush.msra.mxu0 %v2232_v22  ;;  %607 = vmatpush.msra.mxu1 %v2234_v23 }
  0x71   :  { %627 = vmatpush.msra.mxu2 %v2239_v24  ;;  %647 = vmatpush.msra.mxu3 %v2241_v25 }
  0x72   :  { %588 = vmatpush.msra.mxu0 %v2247_v27  ;;  %608 = vmatpush.msra.mxu1 %v2249_v28 }
  0x73   :  { %628 = vmatpush.msra.mxu2 %v2253_v29  ;;  %648 = vmatpush.msra.mxu3 %v2255_v30 }
  0x74   :  { %589 = vmatpush.msra.mxu0 %v2257_v31  ;;  %609 = vmatpush.msra.mxu1 %v2259_v32 }
  0x75   :  { %629 = vmatpush.msra.mxu2 %v2263_v33  ;;  %649 = vmatpush.msra.mxu3 %v2265_v34 }
  0x76   :  { %445 = vmatmul.f32.vlgmr.msrb.gmra.mxu0 %v2123_v0  ;;  %465 = vmatmul.f32.vlgmr.msrb.gmra.mxu1 %v2123_v0 }
  0x77   :  { %485 = vmatmul.f32.vlgmr.msrb.gmra.mxu2 %v2123_v0  ;;  %505 = vmatmul.f32.vlgmr.msrb.gmra.mxu3 %v2123_v0  ;;  %v3216_v0 = vld [vmem:[#allocation41_spill] sm:$0xff] }
  0x78   :  { %590 = vmatpush.msra.mxu0 %v2268_v35  ;;  %610 = vmatpush.msra.mxu1 %v2270_v36 }
  0x79   :  { %630 = vmatpush.msra.mxu2 %v2275_v37  ;;  %650 = vmatpush.msra.mxu3 %v2277_v38 }
  0x7a   :  { %591 = vmatpush.msra.mxu0 %v2283_v40  ;;  %611 = vmatpush.msra.mxu1 %v2285_v41 }
  0x7b   :  { %631 = vmatpush.msra.mxu2 %v2289_v42  ;;  %651 = vmatpush.msra.mxu3 %v2291_v43 }
  0x7c   :  { %592 = vmatpush.msra.mxu0 %v2293_v44  ;;  %612 = vmatpush.msra.mxu1 %v2295_v45 }
  0x7d   :  { %632 = vmatpush.msra.mxu2 %v2299_v46  ;;  %652 = vmatpush.msra.mxu3 %v2301_v47 }
  0x7e   :  { %593 = vmatpush.msra.mxu0 %v2304_v48  ;;  %613 = vmatpush.msra.mxu1 %v2306_v49 }
  0x7f   :  { %633 = vmatpush.msra.mxu2 %v2311_v50  ;;  %653 = vmatpush.msra.mxu3 %v2313_v51 }
  0x80   :  { %594 = vmatpush.msra.mxu0 %v2319_v53  ;;  %614 = vmatpush.msra.mxu1 %v2321_v54 }
  0x81   :  { %634 = vmatpush.msra.mxu2 %v2325_v55  ;;  %654 = vmatpush.msra.mxu3 %v2327_v56 }
  0x82   :  { %595 = vmatpush.msra.mxu0 %v2329_v57  ;;  %615 = vmatpush.msra.mxu1 %v3215_v13 }
  0x83   :  { %635 = vmatpush.msra.mxu2 %v2335_v59  ;;  %655 = vmatpush.msra.mxu3 %v2337_v60 }
  0x84   :  { %596 = vmatpush.msra.mxu0 %v2340_v61  ;;  %616 = vmatpush.msra.mxu1 %v2342_v62 }
  0x85   :  { %636 = vmatpush.msra.mxu2 %v2347_v63  ;;  %656 = vmatpush.msra.mxu3 %v3216_v0 }
  0x86   :  { %597 = vmatpush.msra.mxu0 %v2355_v26  ;;  %617 = vmatpush.msra.mxu1 %v2357_v39 }
  0x87   :  { %637 = vmatpush.msra.mxu2 %v2361_v52  ;;  %657 = vmatpush.msra.mxu3 %v2363_v58 }
  0x88   :  { %736 = vmatpush.msrb.mxu0 %v2177_v1  ;;  %756 = vmatpush.msrb.mxu1 %v2179_v2 }
  0x89   :  { %776 = vmatpush.msrb.mxu2 %v2181_v3  ;;  %796 = vmatpush.msrb.mxu3 %v2183_v4 }
  0x8a   :  { %737 = vmatpush.msrb.mxu0 %v2185_v5  ;;  %757 = vmatpush.msrb.mxu1 %v2187_v6 }
  0x8b   :  { %777 = vmatpush.msrb.mxu2 %v2191_v7  ;;  %797 = vmatpush.msrb.mxu3 %v2193_v8 }
  0x8c   :  { %738 = vmatpush.msrb.mxu0 %v2196_v9  ;;  %758 = vmatpush.msrb.mxu1 %v2198_v10 }
  0x8d   :  { %778 = vmatpush.msrb.mxu2 %v2203_v11  ;;  %798 = vmatpush.msrb.mxu3 %v2205_v12 }
  0x8e   :  { %739 = vmatpush.msrb.mxu0 %v2211_v14  ;;  %759 = vmatpush.msrb.mxu1 %v2213_v15 }
  0x8f   :  { %779 = vmatpush.msrb.mxu2 %v2217_v16  ;;  %799 = vmatpush.msrb.mxu3 %v2219_v17 }
  0x90   :  { %740 = vmatpush.msrb.mxu0 %v2221_v18  ;;  %760 = vmatpush.msrb.mxu1 %v2223_v19 }
  0x91   :  { %780 = vmatpush.msrb.mxu2 %v2227_v20  ;;  %800 = vmatpush.msrb.mxu3 %v2229_v21 }
  0x92   :  { %741 = vmatpush.msrb.mxu0 %v2232_v22  ;;  %761 = vmatpush.msrb.mxu1 %v2234_v23 }
  0x93   :  { %781 = vmatpush.msrb.mxu2 %v2239_v24  ;;  %801 = vmatpush.msrb.mxu3 %v2241_v25 }
  0x94   :  { %742 = vmatpush.msrb.mxu0 %v2247_v27  ;;  %762 = vmatpush.msrb.mxu1 %v2249_v28 }
  0x95   :  { %782 = vmatpush.msrb.mxu2 %v2253_v29  ;;  %802 = vmatpush.msrb.mxu3 %v2255_v30 }
  0x96   :  { %743 = vmatpush.msrb.mxu0 %v2257_v31  ;;  %763 = vmatpush.msrb.mxu1 %v2259_v32 }
  0x97   :  { %783 = vmatpush.msrb.mxu2 %v2263_v33  ;;  %803 = vmatpush.msrb.mxu3 %v2265_v34 }
  0x98   :  { %744 = vmatpush.msrb.mxu0 %v2268_v35  ;;  %764 = vmatpush.msrb.mxu1 %v2270_v36 }
  0x99   :  { %784 = vmatpush.msrb.mxu2 %v2275_v37  ;;  %804 = vmatpush.msrb.mxu3 %v2277_v38 }
  0x9a   :  { %745 = vmatpush.msrb.mxu0 %v2283_v40  ;;  %765 = vmatpush.msrb.mxu1 %v2285_v41 }
  0x9b   :  { %785 = vmatpush.msrb.mxu2 %v2289_v42  ;;  %805 = vmatpush.msrb.mxu3 %v2291_v43 }
  0x9c   :  { %746 = vmatpush.msrb.mxu0 %v2293_v44  ;;  %766 = vmatpush.msrb.mxu1 %v2295_v45 }
  0x9d   :  { %786 = vmatpush.msrb.mxu2 %v2299_v46  ;;  %806 = vmatpush.msrb.mxu3 %v2301_v47 }
  0x9e   :  { %747 = vmatpush.msrb.mxu0 %v2304_v48  ;;  %767 = vmatpush.msrb.mxu1 %v2306_v49 }
  0x9f   :  { %787 = vmatpush.msrb.mxu2 %v2311_v50  ;;  %807 = vmatpush.msrb.mxu3 %v2313_v51 }
  0xa0   :  { %748 = vmatpush.msrb.mxu0 %v2319_v53  ;;  %768 = vmatpush.msrb.mxu1 %v2321_v54 }
  0xa1   :  { %788 = vmatpush.msrb.mxu2 %v2325_v55  ;;  %808 = vmatpush.msrb.mxu3 %v2327_v56 }
  0xa2   :  { %749 = vmatpush.msrb.mxu0 %v2329_v57  ;;  %769 = vmatpush.msrb.mxu1 %v3215_v13  ;;  %v155_v57 = vld [vmem:[#allocation9] sm:$0xf] }
  0xa3   :  { %789 = vmatpush.msrb.mxu2 %v2335_v59  ;;  %809 = vmatpush.msrb.mxu3 %v2337_v60  ;;  %v157_v60 = vperm.slane %v155_v57, 0  ;;  %v158_v56 = vperm.slane %v155_v57, 1 }
  0xa4   :  { %750 = vmatpush.msrb.mxu0 %v2340_v61  ;;  %770 = vmatpush.msrb.mxu1 %v2342_v62 }
  0xa5   :  { %790 = vmatpush.msrb.mxu2 %v2347_v63  ;;  %810 = vmatpush.msrb.mxu3 %v3216_v0 }
  0xa6   :  { %751 = vmatpush.msrb.mxu0 %v2355_v26  ;;  %771 = vmatpush.msrb.mxu1 %v2357_v39  ;;  %v2505_v39 = vperm.slane %v155_v57, 2 }
  0xa7   :  { %791 = vmatpush.msrb.mxu2 %v2361_v52  ;;  %811 = vmatpush.msrb.mxu3 %v2363_v58  ;;  %v2507_v52 = vperm.slane %v155_v57, 3 }
  0xb3   :  { %v182_v13 = vpop.f32.mrf.mxu0  ;;  %v223_v59 = vpop.f32.mrf.mxu1 }
  0xba   :  { %v2497_v61 = vpop.f32.mrf.mxu2  ;;  %v2499_v62 = vpop.f32.mrf.mxu3 }
  0xbb   :  { %v185_v63 = vpop.f32.mrf.mxu0  ;;  %v226_v55 = vpop.f32.mrf.mxu1 }
  0xbc   :  { %v2501_v0 = vadd.f32 %v185_v63, %v157_v60  ;;  %v2503_v26 = vadd.f32 %v226_v55, %v158_v56 }
  0xbe   :  { %3217 = vst [vmem:[#allocation46_spill] sm:$0xff] %v2501_v0 }
  0xbf   :  { %3218 = vst [vmem:[#allocation47_spill] sm:$0xff] %v2503_v26 }
  0xc2   :  { %v267_v58 = vpop.f32.mrf.mxu2  ;;  %v308_v54 = vpop.f32.mrf.mxu3 }
  0xc3   :  { %v2510_v53 = vadd.f32 %v267_v58, %v2505_v39  ;;  %v2513_v51 = vadd.f32 %v308_v54, %v2507_v52  ;;  %v188_v50 = vpop.f32.mrf.mxu0  ;;  %v229_v49 = vpop.f32.mrf.mxu1 }
  0xc4   :  { %v2515_v48 = vadd.f32 %v188_v50, %v157_v60  ;;  %v2517_v63 = vadd.f32 %v229_v49, %v158_v56 }
  0xc5   :  { %3219 = vst [vmem:[#allocation48_spill] sm:$0xff] %v2510_v53 }
  0xc6   :  { %3220 = vst [vmem:[#allocation49_spill] sm:$0xff] %v2513_v51 }
  0xc7   :  { %3221 = vst [vmem:[#allocation50_spill] sm:$0xff] %v2515_v48 }
  0xc8   :  { %3222 = vst [vmem:[#allocation51_spill] sm:$0xff] %v2517_v63 }
  0xca   :  { %v270_v55 = vpop.f32.mrf.mxu2  ;;  %v311_v26 = vpop.f32.mrf.mxu3 }
  0xcb   :  { %v2520_v0 = vadd.f32 %v270_v55, %v2505_v39  ;;  %v2523_v57 = vadd.f32 %v311_v26, %v2507_v52  ;;  %v191_v47 = vpop.f32.mrf.mxu0  ;;  %v232_v58 = vpop.f32.mrf.mxu1 }
  0xcc   :  { %v2525_v53 = vadd.f32 %v191_v47, %v157_v60  ;;  %v2527_v54 = vadd.f32 %v232_v58, %v158_v56 }
  0xcd   :  { %3223 = vst [vmem:[#allocation52_spill] sm:$0xff] %v2520_v0 }
  0xce   :  { %3224 = vst [vmem:[#allocation53_spill] sm:$0xff] %v2523_v57 }
  0xcf   :  { %3225 = vst [vmem:[#allocation54_spill] sm:$0xff] %v2525_v53 }
  0xd0   :  { %3226 = vst [vmem:[#allocation55_spill] sm:$0xff] %v2527_v54 }
  0xd2   :  { %v273_v51 = vpop.f32.mrf.mxu2  ;;  %v314_v46 = vpop.f32.mrf.mxu3 }
  0xd3   :  { %v2530_v50 = vadd.f32 %v273_v51, %v2505_v39  ;;  %v2533_v49 = vadd.f32 %v314_v46, %v2507_v52  ;;  %v194_v63 = vpop.f32.mrf.mxu0  ;;  %v235_v55 = vpop.f32.mrf.mxu1 }
  0xd4   :  { %v2535_v0 = vadd.f32 %v194_v63, %v157_v60  ;;  %v2537_v26 = vadd.f32 %v235_v55, %v158_v56 }
  0xd5   :  { %3227 = vst [vmem:[#allocation56_spill] sm:$0xff] %v2530_v50 }
  0xd6   :  { %3228 = vst [vmem:[#allocation57_spill] sm:$0xff] %v2533_v49 }
  0xd7   :  { %3229 = vst [vmem:[#allocation58_spill] sm:$0xff] %v2535_v0 }
  0xd8   :  { %3230 = vst [vmem:[#allocation59_spill] sm:$0xff] %v2537_v26 }
  0xda   :  { %v276_v57 = vpop.f32.mrf.mxu2  ;;  %v317_v48 = vpop.f32.mrf.mxu3 }
  0xdb   :  { %v2540_v47 = vadd.f32 %v276_v57, %v2505_v39  ;;  %v2543_v58 = vadd.f32 %v317_v48, %v2507_v52  ;;  %v197_v54 = vpop.f32.mrf.mxu0  ;;  %v238_v51 = vpop.f32.mrf.mxu1 }
  0xdc   :  { %v2545_v50 = vadd.f32 %v197_v54, %v157_v60  ;;  %v2547_v46 = vadd.f32 %v238_v51, %v158_v56 }
  0xdd   :  { %3231 = vst [vmem:[#allocation60_spill] sm:$0xff] %v2540_v47 }
  0xde   :  { %3232 = vst [vmem:[#allocation61_spill] sm:$0xff] %v2543_v58 }
  0xdf   :  { %3233 = vst [vmem:[#allocation62_spill] sm:$0xff] %v2545_v50  ;;  %v224_v50 = vadd.f32 %v223_v59, %v158_v56 }
  0xe0   :  { %3234 = vst [vmem:[#allocation63_spill] sm:$0xff] %v2547_v46 }
  0xe2   :  { %v279_v49 = vpop.f32.mrf.mxu2  ;;  %v320_v53 = vpop.f32.mrf.mxu3 }
  0xe3   :  { %v2550_v63 = vadd.f32 %v279_v49, %v2505_v39  ;;  %v2553_v55 = vadd.f32 %v320_v53, %v2507_v52  ;;  %v200_v26 = vpop.f32.mrf.mxu0  ;;  %v241_v57 = vpop.f32.mrf.mxu1 }
  0xe4   :  { %v2555_v47 = vadd.f32 %v200_v26, %v157_v60  ;;  %v2557_v48 = vadd.f32 %v241_v57, %v158_v56 }
  0xe5   :  { %3235 = vst [vmem:[#allocation64_spill] sm:$0xff] %v2550_v63 }
  0xe6   :  { %3236 = vst [vmem:[#allocation65_spill] sm:$0xff] %v2553_v55  ;;  %v183_v55 = vadd.f32 %v182_v13, %v157_v60 }
  0xe7   :  { %3237 = vst [vmem:[#allocation66_spill] sm:$0xff] %v2555_v47 }
  0xe8   :  { %3238 = vst [vmem:[#allocation67_spill] sm:$0xff] %v2557_v48 }
  0xea   :  { %v282_v58 = vpop.f32.mrf.mxu2  ;;  %v323_v0 = vpop.f32.mrf.mxu3 }
  0xeb   :  { %v2560_v54 = vadd.f32 %v282_v58, %v2505_v39  ;;  %v2563_v51 = vadd.f32 %v323_v0, %v2507_v52  ;;  %v203_v46 = vpop.f32.mrf.mxu0  ;;  %v244_v49 = vpop.f32.mrf.mxu1 }
  0xec   :  { %v2565_v63 = vadd.f32 %v203_v46, %v157_v60  ;;  %v2567_v53 = vadd.f32 %v244_v49, %v158_v56  ;;  %v265_v46 = vadd.f32 %v2497_v61, %v2505_v39 }
  0xed   :  { %3239 = vst [vmem:[#allocation68_spill] sm:$0xff] %v2560_v54 }
  0xee   :  { %3240 = vst [vmem:[#allocation69_spill] sm:$0xff] %v2563_v51 }
  0xef   :  { %3241 = vst [vmem:[#allocation70_spill] sm:$0xff] %v2565_v63 }
  0xf0   :  { %3242 = vst [vmem:[#allocation71_spill] sm:$0xff] %v2567_v53 }
  0xf2   :  { %v285_v26 = vpop.f32.mrf.mxu2  ;;  %v326_v47 = vpop.f32.mrf.mxu3 }
  0xf3   :  { %v2570_v57 = vadd.f32 %v285_v26, %v2505_v39  ;;  %v2573_v48 = vadd.f32 %v326_v47, %v2507_v52  ;;  %v446_v58 = vpop.f32.mrf.mxu0  ;;  %v466_v54 = vpop.f32.mrf.mxu1 }
  0xf4   :  { %v509_v0 = vadd.f32 %v446_v58, %v183_v55  ;;  %v510_v51 = vadd.f32 %v466_v54, %v224_v50  ;;  %v306_v50 = vadd.f32 %v2499_v62, %v2507_v52 }
  0xf5   :  { %3243 = vst [vmem:[#allocation72_spill] sm:$0xff] %v2570_v57 }
  0xf6   :  { %3244 = vst [vmem:[#allocation73_spill] sm:$0xff] %v2573_v48  ;;  %v1709_v45 = vmul.f32 -1.442695, %v509_v0  ;;  %v1710_v44 = vmul.f32 -1.442695, %v510_v51 }
  0xf8   :  { %1745 = vpow2.f32 %v1709_v45 }
  0xf9   :  { %1747 = vpow2.f32 %v1710_v44 }
  0xfa   :  { %v486_v56 = vpop.f32.mrf.mxu2  ;;  %v506_v48 = vpop.f32.mrf.mxu3 }
  0xfb   :  { %v511_v59 = vadd.f32 %v486_v56, %v265_v46  ;;  %v512_v51 = vadd.f32 %v506_v48, %v306_v50 }
  0xfd   :  { %v1711_v60 = vmul.f32 -1.442695, %v511_v59 }
  0xfe   :  { %v1746_v13 = vpop.eup %1745 }
  0xff   :  { %v1748_v49 = vpop.eup %1747  ;;  %v522_v26 = vadd.f32 1.0, %v1746_v13  ;;  %1749 = vpow2.f32 %v1711_v60 }
 0x100   :  { %v523_v47 = vadd.f32 1.0, %v1748_v49 }
 0x101   :  { %1751 = vrcp.f32 %v522_v26  ;;  %v536_v46 = vand.u32 2147483648, %v522_v26  ;;  %v534_v60 = vand.u32 2147483647, %v522_v26  ;;  %vm530_vm2 = vweird.f32 %v522_v26 }
 0x102   :  { %1753 = vrcp.f32 %v523_v47  ;;  %v551_v56 = vand.u32 2147483648, %v523_v47  ;;  %v549_v49 = vand.u32 2147483647, %v523_v47  ;;  %vm545_vm3 = vweird.f32 %v523_v47 }
 0x103   :  { %v537_v48 = vor.u32 1.1754944e-38, %v536_v46  ;;  %vm535_vm5 = vcmp.eq.f32.partialorder %v534_v60, 8.507059e+37 }
 0x104   :  { %v552_v50 = vor.u32 1.1754944e-38, %v551_v56  ;;  %vm550_vm7 = vcmp.eq.f32.partialorder %v549_v49, 8.507059e+37 }
 0x105   :  { %v1750_v55 = vpop.eup %1749 }
 0x106   :  { %v524_v45 = vadd.f32 1.0, %v1750_v55 }
 0x107   :  { %v1752_v54 = vpop.eup %1751 }
 0x108   :  { %v1754_v61 = vpop.eup %1753  ;;  %v526_v44 = vmul.f32 %v1752_v54, %v522_v26  ;;  %1755 = vrcp.f32 %v524_v45  ;;  %vm531_vm0 = vweird.f32 %v1752_v54  ;;  %vm560_vm9 = vweird.f32 %v524_v45 }
 0x109   :  { %v541_v39 = vmul.f32 %v1754_v61, %v523_v47  ;;  %1757 = vtanh.f32 %v512_v51  ;;  %vm546_vm1 = vweird.f32 %v1754_v61  ;;  %vm532_vm4 = vmor %vm530_vm2, %vm531_vm0  ;;  %v566_v47 = vand.u32 2147483648, %v524_v45 }
 0x10a   :  { %v527_v58 = vsub.f32 1.0, %v526_v44  ;;  %vm547_vm6 = vmor %vm545_vm3, %vm546_vm1 }
 0x10b   :  { %v542_v0 = vsub.f32 1.0, %v541_v39  ;;  %v567_v56 = vor.u32 1.1754944e-38, %v566_v47 }
 0x10c   :  { %v528_v59 = vmul.f32 %v1752_v54, %v527_v58 }
 0x10d   :  { %v543_v13 = vmul.f32 %v1754_v61, %v542_v0 }
 0x10e   :  { %v1756_v57 = vpop.eup %1755  ;;  %v529_v62 = vadd.f32 %v1752_v54, %v528_v59 }
 0x10f   :  { %v556_v52 = vmul.f32 %v1756_v57, %v524_v45  ;;  %v544_v55 = vadd.f32 %v1754_v61, %v543_v13  ;;  %v1758_v51 = vpop.eup %1757  ;;  %vm561_vm8 = vweird.f32 %v1756_v57 }
 0x110   :  { %v533_v44 = vsel %vm532_vm4, %v1752_v54, %v529_v62  ;;  %v564_v54 = vand.u32 2147483647, %v524_v45  ;;  %vm562_vm10 = vmor %vm560_vm9, %vm561_vm8 }
 0x111   :  { %v557_v39 = vsub.f32 1.0, %v556_v52  ;;  %v538_v58 = vsel %vm535_vm5, %v537_v48, %v533_v44  ;;  %v548_v53 = vsel %vm547_vm6, %v1754_v61, %v544_v55  ;;  %v3274_v52 = vld [vmem:[#allocation49_spill] sm:$0xff] }
 0x112   :  { %v553_v0 = vsel %vm550_vm7, %v552_v50, %v548_v53  ;;  %v572_v63 = vmul.f32 %v1758_v51, %v538_v58  ;;  %vm565_vm11 = vcmp.eq.f32.partialorder %v564_v54, 8.507059e+37 }
 0x113   :  { %v558_v43 = vmul.f32 %v1756_v57, %v557_v39  ;;  %v571_v42 = vmul.f32 0.0, %v553_v0 }
 0x115   :  { %v2579_v59 = vadd.f32 %v572_v63, %v571_v42  ;;  %v559_v26 = vadd.f32 %v1756_v57, %v558_v43 }
 0x117   :  { %1759 = vtanh.f32 %v2579_v59  ;;  %v563_v46 = vsel %vm562_vm10, %v1756_v57, %v559_v26 }
 0x118   :  { %v568_v61 = vsel %vm565_vm11, %v567_v56, %v563_v46 }
 0x11d   :  { %v1760_v60 = vpop.eup %1759 }
 0x11e   :  { %v575_v13 = vmul.f32 %v1760_v60, %v568_v61 }
 0x120   :  { %576 = vst [vmem:[#allocation11] sm:$0xff] %v575_v13  ;;  %598 = vmatmul.f32.vlgmr.msra.gmra.mxu0 %v575_v13  ;;  %618 = vmatmul.f32.vlgmr.msra.gmra.mxu1 %v575_v13 }
 0x121   :  { %638 = vmatmul.f32.vlgmr.msra.gmra.mxu2 %v575_v13  ;;  %658 = vmatmul.f32.vlgmr.msra.gmra.mxu3 %v575_v13 }
 0x122   :  { %890 = vmatpush.msra.mxu0 %v2177_v1  ;;  %910 = vmatpush.msra.mxu1 %v2179_v2  ;;  %v3245_v1 = vld [vmem:[#allocation20_spill] sm:$0xff]  ;;  %v3246_v2 = vld [vmem:[#allocation21_spill] sm:$0xff] }
 0x123   :  { %930 = vmatpush.msra.mxu2 %v2181_v3  ;;  %950 = vmatpush.msra.mxu3 %v2183_v4  ;;  %v3247_v3 = vld [vmem:[#allocation22_spill] sm:$0xff]  ;;  %v3248_v4 = vld [vmem:[#allocation23_spill] sm:$0xff] }
 0x124   :  { %891 = vmatpush.msra.mxu0 %v2185_v5  ;;  %911 = vmatpush.msra.mxu1 %v2187_v6  ;;  %v3249_v5 = vld [vmem:[#allocation24_spill] sm:$0xff]  ;;  %v3250_v6 = vld [vmem:[#allocation25_spill] sm:$0xff] }
 0x125   :  { %931 = vmatpush.msra.mxu2 %v2191_v7  ;;  %951 = vmatpush.msra.mxu3 %v2193_v8  ;;  %v3251_v7 = vld [vmem:[#allocation26_spill] sm:$0xff]  ;;  %v3252_v8 = vld [vmem:[#allocation27_spill] sm:$0xff] }
 0x126   :  { %892 = vmatpush.msra.mxu0 %v2196_v9  ;;  %912 = vmatpush.msra.mxu1 %v2198_v10  ;;  %v3253_v9 = vld [vmem:[#allocation28_spill] sm:$0xff]  ;;  %v3254_v10 = vld [vmem:[#allocation29_spill] sm:$0xff] }
 0x127   :  { %932 = vmatpush.msra.mxu2 %v2203_v11  ;;  %952 = vmatpush.msra.mxu3 %v2205_v12  ;;  %v3255_v11 = vld [vmem:[#allocation30_spill] sm:$0xff]  ;;  %v3256_v12 = vld [vmem:[#allocation31_spill] sm:$0xff] }
 0x128   :  { %893 = vmatpush.msra.mxu0 %v2211_v14  ;;  %913 = vmatpush.msra.mxu1 %v2213_v15  ;;  %v3257_v14 = vld [vmem:[#allocation32_spill] sm:$0xff]  ;;  %v3258_v15 = vld [vmem:[#allocation33_spill] sm:$0xff] }
 0x129   :  { %933 = vmatpush.msra.mxu2 %v2217_v16  ;;  %953 = vmatpush.msra.mxu3 %v2219_v17  ;;  %v3259_v16 = vld [vmem:[#allocation34_spill] sm:$0xff]  ;;  %v3260_v17 = vld [vmem:[#allocation35_spill] sm:$0xff] }
 0x12a   :  { %894 = vmatpush.msra.mxu0 %v2221_v18  ;;  %914 = vmatpush.msra.mxu1 %v2223_v19  ;;  %v3261_v18 = vld [vmem:[#allocation36_spill] sm:$0xff]  ;;  %v3262_v19 = vld [vmem:[#allocation37_spill] sm:$0xff] }
 0x12b   :  { %934 = vmatpush.msra.mxu2 %v2227_v20  ;;  %954 = vmatpush.msra.mxu3 %v2229_v21  ;;  %v3263_v20 = vld [vmem:[#allocation38_spill] sm:$0xff]  ;;  %v3264_v21 = vld [vmem:[#allocation39_spill] sm:$0xff] }
 0x12c   :  { %895 = vmatpush.msra.mxu0 %v2232_v22  ;;  %915 = vmatpush.msra.mxu1 %v2234_v23  ;;  %v3265_v22 = vld [vmem:[#allocation40_spill] sm:$0xff]  ;;  %v3266_v23 = vld [vmem:[#allocation41_spill] sm:$0xff] }
 0x12d   :  { %935 = vmatpush.msra.mxu2 %v2239_v24  ;;  %955 = vmatpush.msra.mxu3 %v2241_v25  ;;  %v3267_v24 = vld [vmem:[#allocation42_spill] sm:$0xff]  ;;  %v3268_v25 = vld [vmem:[#allocation43_spill] sm:$0xff] }
 0x12e   :  { %896 = vmatpush.msra.mxu0 %v2247_v27  ;;  %916 = vmatpush.msra.mxu1 %v2249_v28  ;;  %v3269_v27 = vld [vmem:[#allocation44_spill] sm:$0xff]  ;;  %v3270_v28 = vld [vmem:[#allocation45_spill] sm:$0xff] }
 0x12f   :  { %936 = vmatpush.msra.mxu2 %v2253_v29  ;;  %956 = vmatpush.msra.mxu3 %v2255_v30 }
 0x130   :  { %897 = vmatpush.msra.mxu0 %v2257_v31  ;;  %917 = vmatpush.msra.mxu1 %v2259_v32  ;;  %v3271_v31 = vld [vmem:[#allocation46_spill] sm:$0xff] }
 0x131   :  { %937 = vmatpush.msra.mxu2 %v2263_v33  ;;  %957 = vmatpush.msra.mxu3 %v2265_v34  ;;  %v3272_v33 = vld [vmem:[#allocation47_spill] sm:$0xff] }
 0x132   :  { %898 = vmatpush.msra.mxu0 %v2268_v35  ;;  %918 = vmatpush.msra.mxu1 %v2270_v36 }
 0x133   :  { %938 = vmatpush.msra.mxu2 %v2275_v37  ;;  %958 = vmatpush.msra.mxu3 %v2277_v38  ;;  %v3273_v38 = vld [vmem:[#allocation48_spill] sm:$0xff] }
 0x134   :  { %899 = vmatpush.msra.mxu0 %v2283_v40  ;;  %919 = vmatpush.msra.mxu1 %v2285_v41 }
 0x135   :  { %939 = vmatpush.msra.mxu2 %v3245_v1  ;;  %959 = vmatpush.msra.mxu3 %v3246_v2 }
 0x136   :  { %900 = vmatpush.msra.mxu0 %v3247_v3  ;;  %920 = vmatpush.msra.mxu1 %v3248_v4 }
 0x137   :  { %940 = vmatpush.msra.mxu2 %v3249_v5  ;;  %960 = vmatpush.msra.mxu3 %v3250_v6 }
 0x138   :  { %901 = vmatpush.msra.mxu0 %v3251_v7  ;;  %921 = vmatpush.msra.mxu1 %v3252_v8 }
 0x139   :  { %941 = vmatpush.msra.mxu2 %v3253_v9  ;;  %961 = vmatpush.msra.mxu3 %v3254_v10 }
 0x13a   :  { %902 = vmatpush.msra.mxu0 %v3255_v11  ;;  %922 = vmatpush.msra.mxu1 %v3256_v12 }
 0x13b   :  { %942 = vmatpush.msra.mxu2 %v3257_v14  ;;  %962 = vmatpush.msra.mxu3 %v3258_v15 }
 0x13c   :  { %903 = vmatpush.msra.mxu0 %v3259_v16  ;;  %923 = vmatpush.msra.mxu1 %v3260_v17 }
 0x13d   :  { %943 = vmatpush.msra.mxu2 %v3261_v18  ;;  %963 = vmatpush.msra.mxu3 %v3262_v19 }
 0x13e   :  { %904 = vmatpush.msra.mxu0 %v3263_v20  ;;  %924 = vmatpush.msra.mxu1 %v3264_v21 }
 0x13f   :  { %944 = vmatpush.msra.mxu2 %v3265_v22  ;;  %964 = vmatpush.msra.mxu3 %v3266_v23 }
 0x140   :  { %905 = vmatpush.msra.mxu0 %v3267_v24  ;;  %925 = vmatpush.msra.mxu1 %v3268_v25 }
 0x141   :  { %945 = vmatpush.msra.mxu2 %v3269_v27  ;;  %965 = vmatpush.msra.mxu3 %v3270_v28 }
 0x19d   :  { %v599_v29 = vpop.f32.mrf.mxu0  ;;  %v619_v30 = vpop.f32.mrf.mxu1 }
 0x19e   :  { %v662_v32 = vadd.f32 %v599_v29, %v3271_v31  ;;  %v663_v34 = vadd.f32 %v619_v30, %v3272_v33  ;;  %v2657_v29 = vld [vmem:[#allocation8 + $0x1e8] sm:$0xff]  ;;  %v2660_v30 = vld [vmem:[#allocation8 + $0x1f0] sm:$0xff]  ;;  %v2663_v31 = vld [vmem:[#allocation8 + $0x1f8] sm:$0xff] }
 0x19f   :  { %v2669_v33 = vld [vmem:[#allocation8 + $0x1c8] sm:$0xff] }
 0x1a0   :  { %v1712_v35 = vmul.f32 -1.442695, %v662_v32  ;;  %v1713_v36 = vmul.f32 -1.442695, %v663_v34  ;;  %v2666_v32 = vld [vmem:[#allocation8 + $0x1c0] sm:$0xff]  ;;  %v2672_v34 = vld [vmem:[#allocation8 + $0x1d0] sm:$0xff] }
 0x1a2   :  { %1761 = vpow2.f32 %v1712_v35  ;;  %v2675_v35 = vld [vmem:[#allocation8 + $0x1d8] sm:$0xff] }
 0x1a3   :  { %1763 = vpow2.f32 %v1713_v36  ;;  %v2678_v36 = vld [vmem:[#allocation8 + $0x1a0] sm:$0xff] }
 0x1a4   :  { %v639_v37 = vpop.f32.mrf.mxu2  ;;  %v659_v57 = vpop.f32.mrf.mxu3 }
 0x1a5   :  { %v664_v40 = vadd.f32 %v639_v37, %v3273_v38  ;;  %v665_v48 = vadd.f32 %v659_v57, %v3274_v52  ;;  %v2681_v37 = vld [vmem:[#allocation8 + $0x1a8] sm:$0xff]  ;;  %v2684_v38 = vld [vmem:[#allocation8 + $0x1b0] sm:$0xff] }
 0x1a6   :  { %v2705_v57 = vld [vmem:[#allocation8 + $0x168] sm:$0xff] }
 0x1a7   :  { %v1714_v41 = vmul.f32 -1.442695, %v664_v40  ;;  %v2687_v40 = vld [vmem:[#allocation8 + $0x1b8] sm:$0xff]  ;;  %v2717_v52 = vld [vmem:[#allocation8 + $0x148] sm:$0xff] }
 0x1a8   :  { %v1762_v42 = vpop.eup %1761 }
 0x1a9   :  { %v1764_v43 = vpop.eup %1763  ;;  %v675_v63 = vadd.f32 1.0, %v1762_v42  ;;  %1765 = vpow2.f32 %v1714_v41  ;;  %v2690_v41 = vld [vmem:[#allocation8 + $0x180] sm:$0xff]  ;;  %v2693_v42 = vld [vmem:[#allocation8 + $0x188] sm:$0xff] }
 0x1aa   :  { %v676_v53 = vadd.f32 1.0, %v1764_v43  ;;  %v2696_v43 = vld [vmem:[#allocation8 + $0x190] sm:$0xff] }
 0x1ab   :  { %1767 = vrcp.f32 %v675_v63  ;;  %v689_v58 = vand.u32 2147483648, %v675_v63  ;;  %v687_v47 = vand.u32 2147483647, %v675_v63  ;;  %vm683_vm14 = vweird.f32 %v675_v63 }
 0x1ac   :  { %1769 = vrcp.f32 %v676_v53  ;;  %v704_v0 = vand.u32 2147483648, %v676_v53  ;;  %v702_v46 = vand.u32 2147483647, %v676_v53  ;;  %vm698_vm15 = vweird.f32 %v676_v53 }
 0x1ad   :  { %v690_v13 = vor.u32 1.1754944e-38, %v689_v58  ;;  %vm688_vm2 = vcmp.eq.f32.partialorder %v687_v47, 8.507059e+37  ;;  %v2738_v58 = vld [vmem:[#allocation8 + $0x100] sm:$0xff]  ;;  %v2747_v47 = vld [vmem:[#allocation8 + $0x118] sm:$0xff] }
 0x1ae   :  { %v705_v2 = vor.u32 1.1754944e-38, %v704_v0  ;;  %vm703_vm3 = vcmp.eq.f32.partialorder %v702_v46, 8.507059e+37  ;;  %v2741_v0 = vld [vmem:[#allocation8 + $0x108] sm:$0xff] }
 0x1af   :  { %v1766_v45 = vpop.eup %1765  ;;  %v2753_v46 = vld [vmem:[#allocation8 + $0xe8] sm:$0xff] }
 0x1b0   :  { %v677_v49 = vadd.f32 1.0, %v1766_v45  ;;  %v2708_v45 = vld [vmem:[#allocation8 + $0x170] sm:$0xff] }
 0x1b1   :  { %v1768_v62 = vpop.eup %1767 }
 0x1b2   :  { %v1770_v55 = vpop.eup %1769  ;;  %v679_v50 = vmul.f32 %v1768_v62, %v675_v63  ;;  %1771 = vrcp.f32 %v677_v49  ;;  %vm684_vm12 = vweird.f32 %v1768_v62  ;;  %v719_v15 = vand.u32 2147483648, %v677_v49  ;;  %v2699_v63 = vld [vmem:[#allocation8 + $0x198] sm:$0xff] }
 0x1b3   :  { %v694_v44 = vmul.f32 %v1770_v55, %v676_v53  ;;  %1773 = vtanh.f32 %v665_v48  ;;  %vm699_vm13 = vweird.f32 %v1770_v55  ;;  %vm685_vm0 = vmor %vm683_vm14, %vm684_vm12  ;;  %vm713_vm5 = vweird.f32 %v677_v49  ;;  %v2702_v53 = vld [vmem:[#allocation8 + $0x160] sm:$0xff]  ;;  %v2720_v48 = vld [vmem:[#allocation8 + $0x150] sm:$0xff] }
 0x1b4   :  { %v680_v51 = vsub.f32 1.0, %v679_v50  ;;  %vm700_vm1 = vmor %vm698_vm15, %vm699_vm13  ;;  %v717_v16 = vand.u32 2147483647, %v677_v49  ;;  %v720_v18 = vor.u32 1.1754944e-38, %v719_v15  ;;  %v2726_v50 = vld [vmem:[#allocation8 + $0x120] sm:$0xff]  ;;  %v2804_v15 = vld [vmem:[#allocation8 + $0x70] sm:$0xff] }
 0x1b5   :  { %v695_v39 = vsub.f32 1.0, %v694_v44  ;;  %v2729_v44 = vld [vmem:[#allocation8 + $0x128] sm:$0xff]  ;;  %3287 = vst [vmem:[#allocation32_spill] sm:$0xff] %v2804_v15 }
 0x1b6   :  { %v681_v26 = vmul.f32 %v1768_v62, %v680_v51  ;;  %vm718_vm7 = vcmp.eq.f32.partialorder %v717_v16, 8.507059e+37  ;;  %v2732_v51 = vld [vmem:[#allocation8 + $0x130] sm:$0xff]  ;;  %v2807_v16 = vld [vmem:[#allocation8 + $0x78] sm:$0xff] }
 0x1b7   :  { %v696_v54 = vmul.f32 %v1770_v55, %v695_v39  ;;  %v2735_v39 = vld [vmem:[#allocation8 + $0x138] sm:$0xff]  ;;  %3288 = vst [vmem:[#allocation33_spill] sm:$0xff] %v2807_v16 }
 0x1b8   :  { %v1772_v56 = vpop.eup %1771  ;;  %v682_v60 = vadd.f32 %v1768_v62, %v681_v26  ;;  %v2744_v26 = vld [vmem:[#allocation8 + $0x110] sm:$0xff] }
 0x1b9   :  { %v709_v61 = vmul.f32 %v1772_v56, %v677_v49  ;;  %v697_v1 = vadd.f32 %v1770_v55, %v696_v54  ;;  %v1774_v4 = vpop.eup %1773  ;;  %vm714_vm4 = vweird.f32 %v1772_v56  ;;  %v2711_v49 = vld [vmem:[#allocation8 + $0x178] sm:$0xff]  ;;  %v2750_v54 = vld [vmem:[#allocation8 + $0xe0] sm:$0xff] }
 0x1ba   :  { %v686_v3 = vsel %vm685_vm0, %v1768_v62, %v682_v60  ;;  %vm715_vm6 = vmor %vm713_vm5, %vm714_vm4  ;;  %v2714_v62 = vld [vmem:[#allocation8 + $0x140] sm:$0xff]  ;;  %v2759_v60 = vld [vmem:[#allocation8 + $0xf8] sm:$0xff] }
 0x1bb   :  { %v710_v5 = vsub.f32 1.0, %v709_v61  ;;  %v691_v6 = vsel %vm688_vm2, %v690_v13, %v686_v3  ;;  %v701_v7 = vsel %vm700_vm1, %v1770_v55, %v697_v1  ;;  %v2723_v55 = vld [vmem:[#allocation8 + $0x158] sm:$0xff]  ;;  %v2762_v61 = vld [vmem:[#allocation8 + $0xc0] sm:$0xff]  ;;  %v2765_v13 = vld [vmem:[#allocation8 + $0xc8] sm:$0xff] }
 0x1bc   :  { %v706_v8 = vsel %vm703_vm3, %v705_v2, %v701_v7  ;;  %v725_v9 = vmul.f32 %v1774_v4, %v691_v6  ;;  %v2768_v1 = vld [vmem:[#allocation8 + $0xd0] sm:$0xff]  ;;  %v2771_v2 = vld [vmem:[#allocation8 + $0xd8] sm:$0xff]  ;;  %v2774_v3 = vld [vmem:[#allocation8 + $0xa0] sm:$0xff] }
 0x1bd   :  { %v711_v10 = vmul.f32 %v1772_v56, %v710_v5  ;;  %v724_v11 = vmul.f32 %v706_v8, %v2579_v59  ;;  %v2654_v59 = vld [vmem:[#allocation8 + $0x1e0] sm:$0xff]  ;;  %3275 = vst [vmem:[#allocation20_spill] sm:$0xff] %v2768_v1  ;;  %v2777_v4 = vld [vmem:[#allocation8 + $0xa8] sm:$0xff]  ;;  %v2780_v5 = vld [vmem:[#allocation8 + $0xb0] sm:$0xff] }
 0x1be   :  { %3276 = vst [vmem:[#allocation21_spill] sm:$0xff] %v2771_v2  ;;  %v2783_v6 = vld [vmem:[#allocation8 + $0xb8] sm:$0xff]  ;;  %v2786_v7 = vld [vmem:[#allocation8 + $0x80] sm:$0xff]  ;;  %v2789_v8 = vld [vmem:[#allocation8 + $0x88] sm:$0xff] }
 0x1bf   :  { %v2651_v12 = vadd.f32 %v725_v9, %v724_v11  ;;  %v712_v14 = vadd.f32 %v1772_v56, %v711_v10  ;;  %3277 = vst [vmem:[#allocation22_spill] sm:$0xff] %v2774_v3  ;;  %v2792_v9 = vld [vmem:[#allocation8 + $0x90] sm:$0xff]  ;;  %v2795_v10 = vld [vmem:[#allocation8 + $0x98] sm:$0xff]  ;;  %v2798_v11 = vld [vmem:[#allocation8 + $0x60] sm:$0xff] }
 0x1c0   :  { %3278 = vst [vmem:[#allocation23_spill] sm:$0xff] %v2777_v4 }
 0x1c1   :  { %1775 = vtanh.f32 %v2651_v12  ;;  %v716_v17 = vsel %vm715_vm6, %v1772_v56, %v712_v14  ;;  %v2756_v56 = vld [vmem:[#allocation8 + $0xf0] sm:$0xff]  ;;  %3279 = vst [vmem:[#allocation24_spill] sm:$0xff] %v2780_v5  ;;  %v2801_v14 = vld [vmem:[#allocation8 + $0x68] sm:$0xff] }
 0x1c2   :  { %v721_v20 = vsel %vm718_vm7, %v720_v18, %v716_v17  ;;  %3280 = vst [vmem:[#allocation25_spill] sm:$0xff] %v2783_v6  ;;  %v2810_v17 = vld [vmem:[#allocation8 + $0x40] sm:$0xff]  ;;  %v2813_v18 = vld [vmem:[#allocation8 + $0x48] sm:$0xff] }
 0x1c3   :  { %3281 = vst [vmem:[#allocation26_spill] sm:$0xff] %v2786_v7 }
 0x1c4   :  { %3282 = vst [vmem:[#allocation27_spill] sm:$0xff] %v2789_v8 }
 0x1c5   :  { %3283 = vst [vmem:[#allocation28_spill] sm:$0xff] %v2792_v9 }
 0x1c6   :  { %3284 = vst [vmem:[#allocation29_spill] sm:$0xff] %v2795_v10 }
 0x1c7   :  { %v1776_v19 = vpop.eup %1775  ;;  %3285 = vst [vmem:[#allocation30_spill] sm:$0xff] %v2798_v11 }
 0x1c8   :  { %v728_v21 = vmul.f32 %v1776_v19, %v721_v20  ;;  %3286 = vst [vmem:[#allocation31_spill] sm:$0xff] %v2801_v14  ;;  %v2816_v19 = vld [vmem:[#allocation8 + $0x50] sm:$0xff]  ;;  %v2819_v20 = vld [vmem:[#allocation8 + $0x58] sm:$0xff] }
 0x1c9   :  { %3289 = vst [vmem:[#allocation34_spill] sm:$0xff] %v2810_v17 }
 0x1ca   :  { %730 = vst [vmem:[#allocation11 + $0x8] sm:$0xff] %v728_v21  ;;  %752 = vmatmul.f32.vlgmr.msrb.gmra.mxu0 %v728_v21  ;;  %772 = vmatmul.f32.vlgmr.msrb.gmra.mxu1 %v728_v21 }
 0x1cb   :  { %792 = vmatmul.f32.vlgmr.msrb.gmra.mxu2 %v728_v21  ;;  %812 = vmatmul.f32.vlgmr.msrb.gmra.mxu3 %v728_v21  ;;  %3290 = vst [vmem:[#allocation35_spill] sm:$0xff] %v2813_v18  ;;  %v2822_v21 = vld [vmem:[#allocation8 + $0x20] sm:$0xff] }
 0x1cc   :  { %1044 = vmatpush.msrb.mxu0 %v2654_v59  ;;  %1064 = vmatpush.msrb.mxu1 %v2657_v29  ;;  %3291 = vst [vmem:[#allocation36_spill] sm:$0xff] %v2816_v19 }
 0x1cd   :  { %1084 = vmatpush.msrb.mxu2 %v2660_v30  ;;  %1104 = vmatpush.msrb.mxu3 %v2663_v31  ;;  %3292 = vst [vmem:[#allocation37_spill] sm:$0xff] %v2819_v20 }
 0x1ce   :  { %1045 = vmatpush.msrb.mxu0 %v2666_v32  ;;  %1065 = vmatpush.msrb.mxu1 %v2669_v33  ;;  %3293 = vst [vmem:[#allocation38_spill] sm:$0xff] %v2822_v21 }
 0x1cf   :  { %1085 = vmatpush.msrb.mxu2 %v2672_v34  ;;  %1105 = vmatpush.msrb.mxu3 %v2675_v35 }
 0x1d0   :  { %1046 = vmatpush.msrb.mxu0 %v2678_v36  ;;  %1066 = vmatpush.msrb.mxu1 %v2681_v37 }
 0x1d1   :  { %1086 = vmatpush.msrb.mxu2 %v2684_v38  ;;  %1106 = vmatpush.msrb.mxu3 %v2687_v40 }
 0x1d2   :  { %1047 = vmatpush.msrb.mxu0 %v2690_v41  ;;  %1067 = vmatpush.msrb.mxu1 %v2693_v42 }
 0x1d3   :  { %1087 = vmatpush.msrb.mxu2 %v2696_v43  ;;  %1107 = vmatpush.msrb.mxu3 %v2699_v63 }
 0x1d4   :  { %1048 = vmatpush.msrb.mxu0 %v2702_v53  ;;  %1068 = vmatpush.msrb.mxu1 %v2705_v57 }
 0x1d5   :  { %1088 = vmatpush.msrb.mxu2 %v2708_v45  ;;  %1108 = vmatpush.msrb.mxu3 %v2711_v49 }
 0x1d6   :  { %1049 = vmatpush.msrb.mxu0 %v2714_v62  ;;  %1069 = vmatpush.msrb.mxu1 %v2717_v52 }
 0x1d7   :  { %1089 = vmatpush.msrb.mxu2 %v2720_v48  ;;  %1109 = vmatpush.msrb.mxu3 %v2723_v55 }
 0x1d8   :  { %1050 = vmatpush.msrb.mxu0 %v2726_v50  ;;  %1070 = vmatpush.msrb.mxu1 %v2729_v44 }
 0x1d9   :  { %1090 = vmatpush.msrb.mxu2 %v2732_v51  ;;  %1110 = vmatpush.msrb.mxu3 %v2735_v39 }
 0x1da   :  { %1051 = vmatpush.msrb.mxu0 %v2738_v58  ;;  %1071 = vmatpush.msrb.mxu1 %v2741_v0 }
 0x1db   :  { %1091 = vmatpush.msrb.mxu2 %v2744_v26  ;;  %1111 = vmatpush.msrb.mxu3 %v2747_v47 }
 0x1dc   :  { %1052 = vmatpush.msrb.mxu0 %v2750_v54  ;;  %1072 = vmatpush.msrb.mxu1 %v2753_v46 }
 0x1dd   :  { %1092 = vmatpush.msrb.mxu2 %v2756_v56  ;;  %1112 = vmatpush.msrb.mxu3 %v2759_v60 }
 0x1de   :  { %1053 = vmatpush.msrb.mxu0 %v2762_v61  ;;  %1073 = vmatpush.msrb.mxu1 %v2765_v13 }
 0x1df   :  { %1093 = vmatpush.msrb.mxu2 %v2768_v1  ;;  %1113 = vmatpush.msrb.mxu3 %v2771_v2 }
 0x1e0   :  { %1054 = vmatpush.msrb.mxu0 %v2774_v3  ;;  %1074 = vmatpush.msrb.mxu1 %v2777_v4 }
 0x1e1   :  { %1094 = vmatpush.msrb.mxu2 %v2780_v5  ;;  %1114 = vmatpush.msrb.mxu3 %v2783_v6 }
 0x1e2   :  { %1055 = vmatpush.msrb.mxu0 %v2786_v7  ;;  %1075 = vmatpush.msrb.mxu1 %v2789_v8 }
 0x1e3   :  { %1095 = vmatpush.msrb.mxu2 %v2792_v9  ;;  %1115 = vmatpush.msrb.mxu3 %v2795_v10 }
 0x1e4   :  { %1056 = vmatpush.msrb.mxu0 %v2798_v11  ;;  %1076 = vmatpush.msrb.mxu1 %v2801_v14 }
 0x1e5   :  { %1096 = vmatpush.msrb.mxu2 %v2804_v15  ;;  %1116 = vmatpush.msrb.mxu3 %v2807_v16  ;;  %v2825_v16 = vld [vmem:[#allocation8 + $0x28] sm:$0xff] }
 0x1e6   :  { %1057 = vmatpush.msrb.mxu0 %v2810_v17  ;;  %1077 = vmatpush.msrb.mxu1 %v2813_v18  ;;  %3294 = vst [vmem:[#allocation39_spill] sm:$0xff] %v2825_v16  ;;  %v3295_v18 = vld [vmem:[#allocation50_spill] sm:$0xff]  ;;  %v3296_v17 = vld [vmem:[#allocation51_spill] sm:$0xff] }
 0x1e7   :  { %1097 = vmatpush.msrb.mxu2 %v2816_v19  ;;  %1117 = vmatpush.msrb.mxu3 %v2819_v20 }
 0x1e8   :  { %1058 = vmatpush.msrb.mxu0 %v2822_v21  ;;  %1078 = vmatpush.msrb.mxu1 %v2825_v16 }
 0x1e9   :  { %1098 = vmatpush.msrb.mxu2 %v3265_v22  ;;  %1118 = vmatpush.msrb.mxu3 %v3266_v23  ;;  %v3297_v23 = vld [vmem:[#allocation52_spill] sm:$0xff] }
 0x1ea   :  { %1059 = vmatpush.msrb.mxu0 %v3267_v24  ;;  %1079 = vmatpush.msrb.mxu1 %v3268_v25 }
 0x1eb   :  { %1099 = vmatpush.msrb.mxu2 %v3269_v27  ;;  %1119 = vmatpush.msrb.mxu3 %v3270_v28 }
 0x247   :  { %v753_v20 = vpop.f32.mrf.mxu0  ;;  %v773_v19 = vpop.f32.mrf.mxu1 }
 0x248   :  { %v816_v21 = vadd.f32 %v753_v20, %v3295_v18  ;;  %v817_v15 = vadd.f32 %v773_v19, %v3296_v17  ;;  %v3298_v17 = vld [vmem:[#allocation53_spill] sm:$0xff] }
 0x24a   :  { %v1715_v14 = vmul.f32 -1.442695, %v816_v21  ;;  %v1716_v16 = vmul.f32 -1.442695, %v817_v15 }
 0x24c   :  { %1777 = vpow2.f32 %v1715_v14 }
 0x24d   :  { %1779 = vpow2.f32 %v1716_v16 }
 0x24e   :  { %v793_v22 = vpop.f32.mrf.mxu2  ;;  %v813_v28 = vpop.f32.mrf.mxu3 }
 0x24f   :  { %v818_v11 = vadd.f32 %v793_v22, %v3297_v23  ;;  %v819_v19 = vadd.f32 %v813_v28, %v3298_v17 }
 0x251   :  { %v1717_v24 = vmul.f32 -1.442695, %v818_v11 }
 0x252   :  { %v1778_v10 = vpop.eup %1777 }
 0x253   :  { %v1780_v25 = vpop.eup %1779  ;;  %v829_v9 = vadd.f32 1.0, %v1778_v10  ;;  %1781 = vpow2.f32 %v1717_v24 }
 0x254   :  { %v830_v27 = vadd.f32 1.0, %v1780_v25 }
 0x255   :  { %1783 = vrcp.f32 %v829_v9  ;;  %v843_v11 = vand.u32 2147483648, %v829_v9  ;;  %v841_v24 = vand.u32 2147483647, %v829_v9  ;;  %vm837_vm10 = vweird.f32 %v829_v9 }
 0x256   :  { %1785 = vrcp.f32 %v830_v27  ;;  %v858_v23 = vand.u32 2147483648, %v830_v27  ;;  %v856_v7 = vand.u32 2147483647, %v830_v27  ;;  %vm852_vm11 = vweird.f32 %v830_v27 }
 0x257   :  { %v844_v17 = vor.u32 1.1754944e-38, %v843_v11  ;;  %vm842_vm14 = vcmp.eq.f32.partialorder %v841_v24, 8.507059e+37 }
 0x258   :  { %vm857_vm15 = vcmp.eq.f32.partialorder %v856_v7, 8.507059e+37 }
 0x259   :  { %v1782_v8 = vpop.eup %1781 }
 0x25a   :  { %v831_v18 = vadd.f32 1.0, %v1782_v8 }
 0x25b   :  { %v1784_v20 = vpop.eup %1783 }
 0x25c   :  { %v1786_v15 = vpop.eup %1785  ;;  %v833_v14 = vmul.f32 %v1784_v20, %v829_v9  ;;  %1787 = vrcp.f32 %v831_v18  ;;  %vm838_vm8 = vweird.f32 %v1784_v20  ;;  %v873_v11 = vand.u32 2147483648, %v831_v18 }
 0x25d   :  { %v848_v16 = vmul.f32 %v1786_v15, %v830_v27  ;;  %1789 = vtanh.f32 %v819_v19  ;;  %vm853_vm9 = vweird.f32 %v1786_v15  ;;  %vm839_vm12 = vmor %vm837_vm10, %vm838_vm8  ;;  %vm867_vm1 = vweird.f32 %v831_v18 }
 0x25e   :  { %v834_v21 = vsub.f32 1.0, %v833_v14  ;;  %vm854_vm13 = vmor %vm852_vm11, %vm853_vm9  ;;  %v859_v14 = vor.u32 1.1754944e-38, %v858_v23  ;;  %v874_v24 = vor.u32 1.1754944e-38, %v873_v11  ;;  %v3317_v11 = vld [vmem:[#allocation38_spill] sm:$0xff] }
 0x25f   :  { %v849_v22 = vsub.f32 1.0, %v848_v16 }
 0x260   :  { %v835_v10 = vmul.f32 %v1784_v20, %v834_v21 }
 0x261   :  { %v850_v25 = vmul.f32 %v1786_v15, %v849_v22 }
 0x262   :  { %v1788_v6 = vpop.eup %1787  ;;  %v836_v8 = vadd.f32 %v1784_v20, %v835_v10 }
 0x263   :  { %v863_v28 = vmul.f32 %v1788_v6, %v831_v18  ;;  %v851_v5 = vadd.f32 %v1786_v15, %v850_v25  ;;  %v1790_v19 = vpop.eup %1789  ;;  %vm868_vm0 = vweird.f32 %v1788_v6  ;;  %v3306_v25 = vld [vmem:[#allocation27_spill] sm:$0xff] }
 0x264   :  { %v840_v16 = vsel %vm839_vm12, %v1784_v20, %v836_v8  ;;  %v871_v20 = vand.u32 2147483647, %v831_v18  ;;  %vm869_vm2 = vmor %vm867_vm1, %vm868_vm0  ;;  %v3304_v18 = vld [vmem:[#allocation25_spill] sm:$0xff]  ;;  %v3307_v8 = vld [vmem:[#allocation28_spill] sm:$0xff] }
 0x265   :  { %v864_v4 = vsub.f32 1.0, %v863_v28  ;;  %v845_v21 = vsel %vm842_vm14, %v844_v17, %v840_v16  ;;  %v855_v3 = vsel %vm854_vm13, %v1786_v15, %v851_v5  ;;  %v3305_v15 = vld [vmem:[#allocation26_spill] sm:$0xff]  ;;  %v3308_v28 = vld [vmem:[#allocation29_spill] sm:$0xff]  ;;  %v3311_v16 = vld [vmem:[#allocation32_spill] sm:$0xff] }
 0x266   :  { %v860_v22 = vsel %vm857_vm15, %v859_v14, %v855_v3  ;;  %v879_v2 = vmul.f32 %v1790_v19, %v845_v21  ;;  %vm872_vm3 = vcmp.eq.f32.partialorder %v871_v20, 8.507059e+37  ;;  %v3309_v17 = vld [vmem:[#allocation30_spill] sm:$0xff]  ;;  %v3310_v14 = vld [vmem:[#allocation31_spill] sm:$0xff]  ;;  %v3312_v19 = vld [vmem:[#allocation33_spill] sm:$0xff] }
 0x267   :  { %v865_v1 = vmul.f32 %v1788_v6, %v864_v4  ;;  %v878_v10 = vmul.f32 %v860_v22, %v2651_v12  ;;  %v3299_v12 = vld [vmem:[#allocation20_spill] sm:$0xff]  ;;  %v3302_v4 = vld [vmem:[#allocation23_spill] sm:$0xff]  ;;  %v3313_v21 = vld [vmem:[#allocation34_spill] sm:$0xff] }
 0x268   :  { %v3314_v22 = vld [vmem:[#allocation35_spill] sm:$0xff] }
 0x269   :  { %v2839_v9 = vadd.f32 %v879_v2, %v878_v10  ;;  %v866_v27 = vadd.f32 %v1788_v6, %v865_v1  ;;  %v3300_v1 = vld [vmem:[#allocation21_spill] sm:$0xff]  ;;  %v3301_v2 = vld [vmem:[#allocation22_spill] sm:$0xff]  ;;  %v3315_v10 = vld [vmem:[#allocation36_spill] sm:$0xff] }
 0x26a   :  { %v3318_v20 = vld [vmem:[#allocation39_spill] sm:$0xff] }
 0x26b   :  { %1791 = vtanh.f32 %v2839_v9  ;;  %v870_v23 = vsel %vm869_vm2, %v1788_v6, %v866_v27  ;;  %v3303_v6 = vld [vmem:[#allocation24_spill] sm:$0xff]  ;;  %v3316_v27 = vld [vmem:[#allocation37_spill] sm:$0xff] }
 0x26c   :  { %v875_v7 = vsel %vm872_vm3, %v874_v24, %v870_v23  ;;  %v2900_v23 = vld [vmem:[#allocation8 + $0x30] sm:$0xff]  ;;  %v2903_v24 = vld [vmem:[#allocation8 + $0x38] sm:$0xff] }
 0x26d   :  { %3319 = vst [vmem:[#allocation40_spill] sm:$0xff] %v2900_v23 }
 0x26e   :  { %3320 = vst [vmem:[#allocation41_spill] sm:$0xff] %v2903_v24 }
 0x271   :  { %v1792_v5 = vpop.eup %1791 }
 0x272   :  { %v882_v3 = vmul.f32 %v1792_v5, %v875_v7  ;;  %v2906_v5 = vld [vmem:[#allocation8] sm:$0xff]  ;;  %v2909_v7 = vld [vmem:[#allocation8 + $0x8] sm:$0xff] }
 0x273   :  { %3321 = vst [vmem:[#allocation42_spill] sm:$0xff] %v2906_v5 }
 0x274   :  { %884 = vst [vmem:[#allocation11 + $0x10] sm:$0xff] %v882_v3  ;;  %906 = vmatmul.f32.vlgmr.msra.gmra.mxu0 %v882_v3  ;;  %926 = vmatmul.f32.vlgmr.msra.gmra.mxu1 %v882_v3 }
 0x275   :  { %946 = vmatmul.f32.vlgmr.msra.gmra.mxu2 %v882_v3  ;;  %966 = vmatmul.f32.vlgmr.msra.gmra.mxu3 %v882_v3  ;;  %3322 = vst [vmem:[#allocation43_spill] sm:$0xff] %v2909_v7  ;;  %v2912_v3 = vld [vmem:[#allocation8 + $0x10] sm:$0xff] }
 0x276   :  { %1198 = vmatpush.msra.mxu0 %v2654_v59  ;;  %1218 = vmatpush.msra.mxu1 %v2657_v29  ;;  %3323 = vst [vmem:[#allocation44_spill] sm:$0xff] %v2912_v3 }
 0x277   :  { %1238 = vmatpush.msra.mxu2 %v2660_v30  ;;  %1258 = vmatpush.msra.mxu3 %v2663_v31 }
 0x278   :  { %1199 = vmatpush.msra.mxu0 %v2666_v32  ;;  %1219 = vmatpush.msra.mxu1 %v2669_v33 }
 0x279   :  { %1239 = vmatpush.msra.mxu2 %v2672_v34  ;;  %1259 = vmatpush.msra.mxu3 %v2675_v35 }
 0x27a   :  { %1200 = vmatpush.msra.mxu0 %v2678_v36  ;;  %1220 = vmatpush.msra.mxu1 %v2681_v37 }
 0x27b   :  { %1240 = vmatpush.msra.mxu2 %v2684_v38  ;;  %1260 = vmatpush.msra.mxu3 %v2687_v40 }
 0x27c   :  { %1201 = vmatpush.msra.mxu0 %v2690_v41  ;;  %1221 = vmatpush.msra.mxu1 %v2693_v42 }
 0x27d   :  { %1241 = vmatpush.msra.mxu2 %v2696_v43  ;;  %1261 = vmatpush.msra.mxu3 %v2699_v63 }
 0x27e   :  { %1202 = vmatpush.msra.mxu0 %v2702_v53  ;;  %1222 = vmatpush.msra.mxu1 %v2705_v57 }
 0x27f   :  { %1242 = vmatpush.msra.mxu2 %v2708_v45  ;;  %1262 = vmatpush.msra.mxu3 %v2711_v49 }
 0x280   :  { %1203 = vmatpush.msra.mxu0 %v2714_v62  ;;  %1223 = vmatpush.msra.mxu1 %v2717_v52 }
 0x281   :  { %1243 = vmatpush.msra.mxu2 %v2720_v48  ;;  %1263 = vmatpush.msra.mxu3 %v2723_v55 }
 0x282   :  { %1204 = vmatpush.msra.mxu0 %v2726_v50  ;;  %1224 = vmatpush.msra.mxu1 %v2729_v44 }
 0x283   :  { %1244 = vmatpush.msra.mxu2 %v2732_v51  ;;  %1264 = vmatpush.msra.mxu3 %v2735_v39 }
 0x284   :  { %1205 = vmatpush.msra.mxu0 %v2738_v58  ;;  %1225 = vmatpush.msra.mxu1 %v2741_v0 }
 0x285   :  { %1245 = vmatpush.msra.mxu2 %v2744_v26  ;;  %1265 = vmatpush.msra.mxu3 %v2747_v47 }
 0x286   :  { %1206 = vmatpush.msra.mxu0 %v2750_v54  ;;  %1226 = vmatpush.msra.mxu1 %v2753_v46 }
 0x287   :  { %1246 = vmatpush.msra.mxu2 %v2756_v56  ;;  %1266 = vmatpush.msra.mxu3 %v2759_v60 }
 0x288   :  { %1207 = vmatpush.msra.mxu0 %v2762_v61  ;;  %1227 = vmatpush.msra.mxu1 %v2765_v13 }
 0x289   :  { %1247 = vmatpush.msra.mxu2 %v3299_v12  ;;  %1267 = vmatpush.msra.mxu3 %v3300_v1 }
 0x28a   :  { %1208 = vmatpush.msra.mxu0 %v3301_v2  ;;  %1228 = vmatpush.msra.mxu1 %v3302_v4 }
 0x28b   :  { %1248 = vmatpush.msra.mxu2 %v3303_v6  ;;  %1268 = vmatpush.msra.mxu3 %v3304_v18 }
 0x28c   :  { %1209 = vmatpush.msra.mxu0 %v3305_v15  ;;  %1229 = vmatpush.msra.mxu1 %v3306_v25 }
 0x28d   :  { %1249 = vmatpush.msra.mxu2 %v3307_v8  ;;  %1269 = vmatpush.msra.mxu3 %v3308_v28 }
 0x28e   :  { %1210 = vmatpush.msra.mxu0 %v3309_v17  ;;  %1230 = vmatpush.msra.mxu1 %v3310_v14 }
 0x28f   :  { %1250 = vmatpush.msra.mxu2 %v3311_v16  ;;  %1270 = vmatpush.msra.mxu3 %v3312_v19 }
 0x290   :  { %1211 = vmatpush.msra.mxu0 %v3313_v21  ;;  %1231 = vmatpush.msra.mxu1 %v3314_v22 }
 0x291   :  { %1251 = vmatpush.msra.mxu2 %v3315_v10  ;;  %1271 = vmatpush.msra.mxu3 %v3316_v27  ;;  %v3325_v27 = vld [vmem:[#allocation54_spill] sm:$0xff]  ;;  %v3326_v10 = vld [vmem:[#allocation55_spill] sm:$0xff] }
 0x292   :  { %1212 = vmatpush.msra.mxu0 %v3317_v11  ;;  %1232 = vmatpush.msra.mxu1 %v3318_v20  ;;  %v2915_v20 = vld [vmem:[#allocation8 + $0x18] sm:$0xff] }
 0x293   :  { %1252 = vmatpush.msra.mxu2 %v2900_v23  ;;  %1272 = vmatpush.msra.mxu3 %v2903_v24  ;;  %3324 = vst [vmem:[#allocation45_spill] sm:$0xff] %v2915_v20 }
 0x294   :  { %1213 = vmatpush.msra.mxu0 %v2906_v5  ;;  %1233 = vmatpush.msra.mxu1 %v2909_v7  ;;  %v3327_v7 = vld [vmem:[#allocation56_spill] sm:$0xff] }
 0x295   :  { %1253 = vmatpush.msra.mxu2 %v2912_v3  ;;  %1273 = vmatpush.msra.mxu3 %v2915_v20 }
 0x2f1   :  { %v907_v23 = vpop.f32.mrf.mxu0  ;;  %v927_v11 = vpop.f32.mrf.mxu1 }
 0x2f2   :  { %v970_v24 = vadd.f32 %v907_v23, %v3325_v27  ;;  %v971_v22 = vadd.f32 %v927_v11, %v3326_v10  ;;  %v3328_v10 = vld [vmem:[#allocation57_spill] sm:$0xff] }
 0x2f4   :  { %v1718_v21 = vmul.f32 -1.442695, %v970_v24  ;;  %v1719_v5 = vmul.f32 -1.442695, %v971_v22 }
 0x2f6   :  { %1793 = vpow2.f32 %v1718_v21 }
 0x2f7   :  { %1795 = vpow2.f32 %v1719_v5 }
 0x2f8   :  { %v947_v19 = vpop.f32.mrf.mxu2  ;;  %v967_v20 = vpop.f32.mrf.mxu3 }
 0x2f9   :  { %v972_v16 = vadd.f32 %v947_v19, %v3327_v7  ;;  %v973_v11 = vadd.f32 %v967_v20, %v3328_v10 }
 0x2fb   :  { %v1720_v14 = vmul.f32 -1.442695, %v972_v16 }
 0x2fc   :  { %v1794_v17 = vpop.eup %1793 }
 0x2fd   :  { %v1796_v3 = vpop.eup %1795  ;;  %v983_v28 = vadd.f32 1.0, %v1794_v17  ;;  %1797 = vpow2.f32 %v1720_v14 }
 0x2fe   :  { %v984_v8 = vadd.f32 1.0, %v1796_v3 }
 0x2ff   :  { %1799 = vrcp.f32 %v983_v28  ;;  %v997_v16 = vand.u32 2147483648, %v983_v28  ;;  %v995_v14 = vand.u32 2147483647, %v983_v28  ;;  %vm991_vm6 = vweird.f32 %v983_v28 }
 0x300   :  { %1801 = vrcp.f32 %v984_v8  ;;  %v1012_v7 = vand.u32 2147483648, %v984_v8  ;;  %v1010_v15 = vand.u32 2147483647, %v984_v8  ;;  %vm1006_vm7 = vweird.f32 %v984_v8 }
 0x301   :  { %v998_v10 = vor.u32 1.1754944e-38, %v997_v16  ;;  %vm996_vm10 = vcmp.eq.f32.partialorder %v995_v14, 8.507059e+37 }
 0x302   :  { %vm1011_vm11 = vcmp.eq.f32.partialorder %v1010_v15, 8.507059e+37 }
 0x303   :  { %v1798_v25 = vpop.eup %1797 }
 0x304   :  { %v985_v27 = vadd.f32 1.0, %v1798_v25 }
 0x305   :  { %v1800_v23 = vpop.eup %1799 }
 0x306   :  { %v1802_v22 = vpop.eup %1801  ;;  %v987_v21 = vmul.f32 %v1800_v23, %v983_v28  ;;  %1803 = vrcp.f32 %v985_v27  ;;  %vm992_vm4 = vweird.f32 %v1800_v23  ;;  %v1027_v16 = vand.u32 2147483648, %v985_v27 }
 0x307   :  { %v1002_v24 = vmul.f32 %v1802_v22, %v984_v8  ;;  %1805 = vtanh.f32 %v973_v11  ;;  %vm1007_vm5 = vweird.f32 %v1802_v22  ;;  %vm993_vm8 = vmor %vm991_vm6, %vm992_vm4  ;;  %vm1021_vm13 = vweird.f32 %v985_v27 }
 0x308   :  { %v988_v5 = vsub.f32 1.0, %v987_v21  ;;  %vm1008_vm9 = vmor %vm1006_vm7, %vm1007_vm5  ;;  %v1013_v21 = vor.u32 1.1754944e-38, %v1012_v7  ;;  %v1028_v14 = vor.u32 1.1754944e-38, %v1027_v16  ;;  %v3347_v16 = vld [vmem:[#allocation38_spill] sm:$0xff] }
 0x309   :  { %v1003_v19 = vsub.f32 1.0, %v1002_v24 }
 0x30a   :  { %v989_v17 = vmul.f32 %v1800_v23, %v988_v5 }
 0x30b   :  { %v1004_v3 = vmul.f32 %v1802_v22, %v1003_v19 }
 0x30c   :  { %v1804_v18 = vpop.eup %1803  ;;  %v990_v25 = vadd.f32 %v1800_v23, %v989_v17 }
 0x30d   :  { %v1017_v20 = vmul.f32 %v1804_v18, %v985_v27  ;;  %v1005_v6 = vadd.f32 %v1802_v22, %v1004_v3  ;;  %v1806_v11 = vpop.eup %1805  ;;  %vm1022_vm12 = vweird.f32 %v1804_v18  ;;  %v3336_v3 = vld [vmem:[#allocation27_spill] sm:$0xff] }
 0x30e   :  { %v994_v24 = vsel %vm993_vm8, %v1800_v23, %v990_v25  ;;  %v1025_v23 = vand.u32 2147483647, %v985_v27  ;;  %vm1023_vm14 = vmor %vm1021_vm13, %vm1022_vm12  ;;  %v3334_v27 = vld [vmem:[#allocation25_spill] sm:$0xff]  ;;  %v3337_v25 = vld [vmem:[#allocation28_spill] sm:$0xff] }
 0x30f   :  { %v1018_v4 = vsub.f32 1.0, %v1017_v20  ;;  %v999_v5 = vsel %vm996_vm10, %v998_v10, %v994_v24  ;;  %v1009_v2 = vsel %vm1008_vm9, %v1802_v22, %v1005_v6  ;;  %v3335_v22 = vld [vmem:[#allocation26_spill] sm:$0xff]  ;;  %v3338_v20 = vld [vmem:[#allocation29_spill] sm:$0xff]  ;;  %v3341_v24 = vld [vmem:[#allocation32_spill] sm:$0xff] }
 0x310   :  { %v1014_v19 = vsel %vm1011_vm11, %v1013_v21, %v1009_v2  ;;  %v1033_v1 = vmul.f32 %v1806_v11, %v999_v5  ;;  %vm1026_vm15 = vcmp.eq.f32.partialorder %v1025_v23, 8.507059e+37  ;;  %v3339_v10 = vld [vmem:[#allocation30_spill] sm:$0xff]  ;;  %v3340_v21 = vld [vmem:[#allocation31_spill] sm:$0xff]  ;;  %v3342_v11 = vld [vmem:[#allocation33_spill] sm:$0xff] }
 0x311   :  { %v1019_v12 = vmul.f32 %v1804_v18, %v1018_v4  ;;  %v1032_v17 = vmul.f32 %v1014_v19, %v2839_v9  ;;  %v3329_v9 = vld [vmem:[#allocation20_spill] sm:$0xff]  ;;  %v3332_v4 = vld [vmem:[#allocation23_spill] sm:$0xff]  ;;  %v3343_v5 = vld [vmem:[#allocation34_spill] sm:$0xff] }
 0x312   :  { %v3344_v19 = vld [vmem:[#allocation35_spill] sm:$0xff] }
 0x313   :  { %v2923_v28 = vadd.f32 %v1033_v1, %v1032_v17  ;;  %v1020_v8 = vadd.f32 %v1804_v18, %v1019_v12  ;;  %v3330_v12 = vld [vmem:[#allocation21_spill] sm:$0xff]  ;;  %v3331_v1 = vld [vmem:[#allocation22_spill] sm:$0xff]  ;;  %v3345_v17 = vld [vmem:[#allocation36_spill] sm:$0xff] }
 0x314   :  { %v3348_v23 = vld [vmem:[#allocation39_spill] sm:$0xff] }
 0x315   :  { %1807 = vtanh.f32 %v2923_v28  ;;  %v1024_v7 = vsel %vm1023_vm14, %v1804_v18, %v1020_v8  ;;  %v3333_v18 = vld [vmem:[#allocation24_spill] sm:$0xff]  ;;  %v3346_v8 = vld [vmem:[#allocation37_spill] sm:$0xff] }
 0x316   :  { %v1029_v15 = vsel %vm1026_vm15, %v1028_v14, %v1024_v7  ;;  %v3349_v7 = vld [vmem:[#allocation40_spill] sm:$0xff]  ;;  %v3350_v14 = vld [vmem:[#allocation41_spill] sm:$0xff] }
 0x31b   :  { %v1808_v6 = vpop.eup %1807 }
 0x31c   :  { %v1036_v2 = vmul.f32 %v1808_v6, %v1029_v15  ;;  %v3351_v6 = vld [vmem:[#allocation42_spill] sm:$0xff]  ;;  %v3352_v15 = vld [vmem:[#allocation43_spill] sm:$0xff] }
 0x31e   :  { %1038 = vst [vmem:[#allocation11 + $0x18] sm:$0xff] %v1036_v2  ;;  %1060 = vmatmul.f32.vlgmr.msrb.gmra.mxu0 %v1036_v2  ;;  %1080 = vmatmul.f32.vlgmr.msrb.gmra.mxu1 %v1036_v2 }
 0x31f   :  { %1100 = vmatmul.f32.vlgmr.msrb.gmra.mxu2 %v1036_v2  ;;  %1120 = vmatmul.f32.vlgmr.msrb.gmra.mxu3 %v1036_v2  ;;  %v3353_v2 = vld [vmem:[#allocation44_spill] sm:$0xff] }
 0x320   :  { %1352 = vmatpush.msrb.mxu0 %v2654_v59  ;;  %1372 = vmatpush.msrb.mxu1 %v2657_v29 }
 0x321   :  { %1392 = vmatpush.msrb.mxu2 %v2660_v30  ;;  %1412 = vmatpush.msrb.mxu3 %v2663_v31 }
 0x322   :  { %1353 = vmatpush.msrb.mxu0 %v2666_v32  ;;  %1373 = vmatpush.msrb.mxu1 %v2669_v33 }
 0x323   :  { %1393 = vmatpush.msrb.mxu2 %v2672_v34  ;;  %1413 = vmatpush.msrb.mxu3 %v2675_v35 }
 0x324   :  { %1354 = vmatpush.msrb.mxu0 %v2678_v36  ;;  %1374 = vmatpush.msrb.mxu1 %v2681_v37 }
 0x325   :  { %1394 = vmatpush.msrb.mxu2 %v2684_v38  ;;  %1414 = vmatpush.msrb.mxu3 %v2687_v40 }
 0x326   :  { %1355 = vmatpush.msrb.mxu0 %v2690_v41  ;;  %1375 = vmatpush.msrb.mxu1 %v2693_v42 }
 0x327   :  { %1395 = vmatpush.msrb.mxu2 %v2696_v43  ;;  %1415 = vmatpush.msrb.mxu3 %v2699_v63 }
 0x328   :  { %1356 = vmatpush.msrb.mxu0 %v2702_v53  ;;  %1376 = vmatpush.msrb.mxu1 %v2705_v57 }
 0x329   :  { %1396 = vmatpush.msrb.mxu2 %v2708_v45  ;;  %1416 = vmatpush.msrb.mxu3 %v2711_v49 }
 0x32a   :  { %1357 = vmatpush.msrb.mxu0 %v2714_v62  ;;  %1377 = vmatpush.msrb.mxu1 %v2717_v52 }
 0x32b   :  { %1397 = vmatpush.msrb.mxu2 %v2720_v48  ;;  %1417 = vmatpush.msrb.mxu3 %v2723_v55 }
 0x32c   :  { %1358 = vmatpush.msrb.mxu0 %v2726_v50  ;;  %1378 = vmatpush.msrb.mxu1 %v2729_v44 }
 0x32d   :  { %1398 = vmatpush.msrb.mxu2 %v2732_v51  ;;  %1418 = vmatpush.msrb.mxu3 %v2735_v39 }
 0x32e   :  { %1359 = vmatpush.msrb.mxu0 %v2738_v58  ;;  %1379 = vmatpush.msrb.mxu1 %v2741_v0 }
 0x32f   :  { %1399 = vmatpush.msrb.mxu2 %v2744_v26  ;;  %1419 = vmatpush.msrb.mxu3 %v2747_v47 }
 0x330   :  { %1360 = vmatpush.msrb.mxu0 %v2750_v54  ;;  %1380 = vmatpush.msrb.mxu1 %v2753_v46 }
 0x331   :  { %1400 = vmatpush.msrb.mxu2 %v2756_v56  ;;  %1420 = vmatpush.msrb.mxu3 %v2759_v60 }
 0x332   :  { %1361 = vmatpush.msrb.mxu0 %v2762_v61  ;;  %1381 = vmatpush.msrb.mxu1 %v2765_v13 }
 0x333   :  { %1401 = vmatpush.msrb.mxu2 %v3329_v9  ;;  %1421 = vmatpush.msrb.mxu3 %v3330_v12 }
 0x334   :  { %1362 = vmatpush.msrb.mxu0 %v3331_v1  ;;  %1382 = vmatpush.msrb.mxu1 %v3332_v4 }
 0x335   :  { %1402 = vmatpush.msrb.mxu2 %v3333_v18  ;;  %1422 = vmatpush.msrb.mxu3 %v3334_v27 }
 0x336   :  { %1363 = vmatpush.msrb.mxu0 %v3335_v22  ;;  %1383 = vmatpush.msrb.mxu1 %v3336_v3 }
 0x337   :  { %1403 = vmatpush.msrb.mxu2 %v3337_v25  ;;  %1423 = vmatpush.msrb.mxu3 %v3338_v20 }
 0x338   :  { %1364 = vmatpush.msrb.mxu0 %v3339_v10  ;;  %1384 = vmatpush.msrb.mxu1 %v3340_v21 }
 0x339   :  { %1404 = vmatpush.msrb.mxu2 %v3341_v24  ;;  %1424 = vmatpush.msrb.mxu3 %v3342_v11  ;;  %v3355_v11 = vld [vmem:[#allocation58_spill] sm:$0xff]  ;;  %v3356_v24 = vld [vmem:[#allocation59_spill] sm:$0xff] }
 0x33a   :  { %1365 = vmatpush.msrb.mxu0 %v3343_v5  ;;  %1385 = vmatpush.msrb.mxu1 %v3344_v19  ;;  %v3354_v5 = vld [vmem:[#allocation45_spill] sm:$0xff] }
 0x33b   :  { %1405 = vmatpush.msrb.mxu2 %v3345_v17  ;;  %1425 = vmatpush.msrb.mxu3 %v3346_v8 }
 0x33c   :  { %1366 = vmatpush.msrb.mxu0 %v3347_v16  ;;  %1386 = vmatpush.msrb.mxu1 %v3348_v23 }
 0x33d   :  { %1406 = vmatpush.msrb.mxu2 %v3349_v7  ;;  %1426 = vmatpush.msrb.mxu3 %v3350_v14  ;;  %v3357_v14 = vld [vmem:[#allocation60_spill] sm:$0xff] }
 0x33e   :  { %1367 = vmatpush.msrb.mxu0 %v3351_v6  ;;  %1387 = vmatpush.msrb.mxu1 %v3352_v15 }
 0x33f   :  { %1407 = vmatpush.msrb.mxu2 %v3353_v2  ;;  %1427 = vmatpush.msrb.mxu3 %v3354_v5 }
 0x39b   :  { %v1061_v19 = vpop.f32.mrf.mxu0  ;;  %v1081_v17 = vpop.f32.mrf.mxu1 }
 0x39c   :  { %v1124_v8 = vadd.f32 %v1061_v19, %v3355_v11  ;;  %v1125_v16 = vadd.f32 %v1081_v17, %v3356_v24  ;;  %v3358_v24 = vld [vmem:[#allocation61_spill] sm:$0xff] }
 0x39e   :  { %v1721_v21 = vmul.f32 -1.442695, %v1124_v8  ;;  %v1722_v23 = vmul.f32 -1.442695, %v1125_v16 }
 0x3a0   :  { %1809 = vpow2.f32 %v1721_v21 }
 0x3a1   :  { %1811 = vpow2.f32 %v1722_v23 }
 0x3a2   :  { %v1101_v7 = vpop.f32.mrf.mxu2  ;;  %v1121_v5 = vpop.f32.mrf.mxu3 }
 0x3a3   :  { %v1126_v10 = vadd.f32 %v1101_v7, %v3357_v14  ;;  %v1127_v17 = vadd.f32 %v1121_v5, %v3358_v24 }
 0x3a5   :  { %v1723_v6 = vmul.f32 -1.442695, %v1126_v10 }
 0x3a6   :  { %v1810_v20 = vpop.eup %1809 }
 0x3a7   :  { %v1812_v15 = vpop.eup %1811  ;;  %v1137_v25 = vadd.f32 1.0, %v1810_v20  ;;  %1813 = vpow2.f32 %v1723_v6 }
 0x3a8   :  { %v1138_v2 = vadd.f32 1.0, %v1812_v15 }
 0x3a9   :  { %1815 = vrcp.f32 %v1137_v25  ;;  %v1151_v10 = vand.u32 2147483648, %v1137_v25  ;;  %v1149_v6 = vand.u32 2147483647, %v1137_v25  ;;  %vm1145_vm2 = vweird.f32 %v1137_v25 }
 0x3aa   :  { %1817 = vrcp.f32 %v1138_v2  ;;  %v1166_v14 = vand.u32 2147483648, %v1138_v2  ;;  %v1164_v22 = vand.u32 2147483647, %v1138_v2  ;;  %vm1160_vm3 = vweird.f32 %v1138_v2 }
 0x3ab   :  { %v1152_v24 = vor.u32 1.1754944e-38, %v1151_v10  ;;  %vm1150_vm6 = vcmp.eq.f32.partialorder %v1149_v6, 8.507059e+37 }
 0x3ac   :  { %vm1165_vm7 = vcmp.eq.f32.partialorder %v1164_v22, 8.507059e+37 }
 0x3ad   :  { %v1814_v3 = vpop.eup %1813 }
 0x3ae   :  { %v1139_v11 = vadd.f32 1.0, %v1814_v3 }
 0x3af   :  { %v1816_v19 = vpop.eup %1815 }
 0x3b0   :  { %v1818_v8 = vpop.eup %1817  ;;  %v1141_v21 = vmul.f32 %v1816_v19, %v1137_v25  ;;  %1819 = vrcp.f32 %v1139_v11  ;;  %vm1146_vm0 = vweird.f32 %v1816_v19  ;;  %v1181_v10 = vand.u32 2147483648, %v1139_v11 }
 0x3b1   :  { %v1156_v16 = vmul.f32 %v1818_v8, %v1138_v2  ;;  %1821 = vtanh.f32 %v1127_v17  ;;  %vm1161_vm1 = vweird.f32 %v1818_v8  ;;  %vm1147_vm4 = vmor %vm1145_vm2, %vm1146_vm0  ;;  %vm1175_vm9 = vweird.f32 %v1139_v11 }
 0x3b2   :  { %v1142_v23 = vsub.f32 1.0, %v1141_v21  ;;  %vm1162_vm5 = vmor %vm1160_vm3, %vm1161_vm1  ;;  %v1167_v21 = vor.u32 1.1754944e-38, %v1166_v14  ;;  %v1182_v6 = vor.u32 1.1754944e-38, %v1181_v10 }
 0x3b3   :  { %v1157_v7 = vsub.f32 1.0, %v1156_v16 }
 0x3b4   :  { %v1143_v20 = vmul.f32 %v1816_v19, %v1142_v23 }
 0x3b5   :  { %v1158_v15 = vmul.f32 %v1818_v8, %v1157_v7 }
 0x3b6   :  { %v1820_v27 = vpop.eup %1819  ;;  %v1144_v3 = vadd.f32 %v1816_v19, %v1143_v20 }
 0x3b7   :  { %v1171_v5 = vmul.f32 %v1820_v27, %v1139_v11  ;;  %v1159_v18 = vadd.f32 %v1818_v8, %v1158_v15  ;;  %v1822_v17 = vpop.eup %1821  ;;  %vm1176_vm8 = vweird.f32 %v1820_v27 }
 0x3b8   :  { %v1148_v16 = vsel %vm1147_vm4, %v1816_v19, %v1144_v3  ;;  %v1179_v19 = vand.u32 2147483647, %v1139_v11  ;;  %vm1177_vm10 = vmor %vm1175_vm9, %vm1176_vm8  ;;  %v3388_v3 = vld [vmem:[#allocation65_spill] sm:$0xff] }
 0x3b9   :  { %v1172_v4 = vsub.f32 1.0, %v1171_v5  ;;  %v1153_v23 = vsel %vm1150_vm6, %v1152_v24, %v1148_v16  ;;  %v1163_v1 = vsel %vm1162_vm5, %v1818_v8, %v1159_v18 }
 0x3ba   :  { %v1168_v7 = vsel %vm1165_vm7, %v1167_v21, %v1163_v1  ;;  %v1187_v12 = vmul.f32 %v1822_v17, %v1153_v23  ;;  %vm1180_vm11 = vcmp.eq.f32.partialorder %v1179_v19, 8.507059e+37 }
 0x3bb   :  { %v1173_v9 = vmul.f32 %v1820_v27, %v1172_v4  ;;  %v1186_v20 = vmul.f32 %v1168_v7, %v2923_v28 }
 0x3bd   :  { %v2995_v25 = vadd.f32 %v1187_v12, %v1186_v20  ;;  %v1174_v2 = vadd.f32 %v1820_v27, %v1173_v9 }
 0x3bf   :  { %1823 = vtanh.f32 %v2995_v25  ;;  %v1178_v14 = vsel %vm1177_vm10, %v1820_v27, %v1174_v2 }
 0x3c0   :  { %v1183_v22 = vsel %vm1180_vm11, %v1182_v6, %v1178_v14 }
 0x3c5   :  { %v1824_v18 = vpop.eup %1823 }
 0x3c6   :  { %v1190_v1 = vmul.f32 %v1824_v18, %v1183_v22 }
 0x3c8   :  { %1192 = vst [vmem:[#allocation11 + $0x20] sm:$0xff] %v1190_v1  ;;  %1214 = vmatmul.f32.vlgmr.msra.gmra.mxu0 %v1190_v1  ;;  %1234 = vmatmul.f32.vlgmr.msra.gmra.mxu1 %v1190_v1 }
 0x3c9   :  { %1254 = vmatmul.f32.vlgmr.msra.gmra.mxu2 %v1190_v1  ;;  %1274 = vmatmul.f32.vlgmr.msra.gmra.mxu3 %v1190_v1 }
 0x3ca   :  { %1506 = vmatpush.msra.mxu0 %v2654_v59  ;;  %1526 = vmatpush.msra.mxu1 %v2657_v29  ;;  %v3359_v59 = vld [vmem:[#allocation20_spill] sm:$0xff]  ;;  %v3360_v29 = vld [vmem:[#allocation21_spill] sm:$0xff] }
 0x3cb   :  { %1546 = vmatpush.msra.mxu2 %v2660_v30  ;;  %1566 = vmatpush.msra.mxu3 %v2663_v31  ;;  %v3361_v30 = vld [vmem:[#allocation22_spill] sm:$0xff]  ;;  %v3362_v31 = vld [vmem:[#allocation23_spill] sm:$0xff] }
 0x3cc   :  { %1507 = vmatpush.msra.mxu0 %v2666_v32  ;;  %1527 = vmatpush.msra.mxu1 %v2669_v33  ;;  %v3363_v32 = vld [vmem:[#allocation24_spill] sm:$0xff]  ;;  %v3364_v33 = vld [vmem:[#allocation25_spill] sm:$0xff] }
 0x3cd   :  { %1547 = vmatpush.msra.mxu2 %v2672_v34  ;;  %1567 = vmatpush.msra.mxu3 %v2675_v35  ;;  %v3365_v34 = vld [vmem:[#allocation26_spill] sm:$0xff]  ;;  %v3366_v35 = vld [vmem:[#allocation27_spill] sm:$0xff] }
 0x3ce   :  { %1508 = vmatpush.msra.mxu0 %v2678_v36  ;;  %1528 = vmatpush.msra.mxu1 %v2681_v37  ;;  %v3367_v36 = vld [vmem:[#allocation28_spill] sm:$0xff]  ;;  %v3368_v37 = vld [vmem:[#allocation29_spill] sm:$0xff] }
 0x3cf   :  { %1548 = vmatpush.msra.mxu2 %v2684_v38  ;;  %1568 = vmatpush.msra.mxu3 %v2687_v40  ;;  %v3369_v38 = vld [vmem:[#allocation30_spill] sm:$0xff]  ;;  %v3370_v40 = vld [vmem:[#allocation31_spill] sm:$0xff] }
 0x3d0   :  { %1509 = vmatpush.msra.mxu0 %v2690_v41  ;;  %1529 = vmatpush.msra.mxu1 %v2693_v42  ;;  %v3371_v41 = vld [vmem:[#allocation32_spill] sm:$0xff]  ;;  %v3372_v42 = vld [vmem:[#allocation33_spill] sm:$0xff] }
 0x3d1   :  { %1549 = vmatpush.msra.mxu2 %v2696_v43  ;;  %1569 = vmatpush.msra.mxu3 %v2699_v63  ;;  %v3373_v43 = vld [vmem:[#allocation34_spill] sm:$0xff]  ;;  %v3374_v63 = vld [vmem:[#allocation35_spill] sm:$0xff] }
 0x3d2   :  { %1510 = vmatpush.msra.mxu0 %v2702_v53  ;;  %1530 = vmatpush.msra.mxu1 %v2705_v57  ;;  %v3375_v53 = vld [vmem:[#allocation36_spill] sm:$0xff]  ;;  %v3376_v57 = vld [vmem:[#allocation37_spill] sm:$0xff] }
 0x3d3   :  { %1550 = vmatpush.msra.mxu2 %v2708_v45  ;;  %1570 = vmatpush.msra.mxu3 %v2711_v49  ;;  %v3377_v45 = vld [vmem:[#allocation38_spill] sm:$0xff]  ;;  %v3378_v49 = vld [vmem:[#allocation39_spill] sm:$0xff] }
 0x3d4   :  { %1511 = vmatpush.msra.mxu0 %v2714_v62  ;;  %1531 = vmatpush.msra.mxu1 %v2717_v52  ;;  %v3379_v62 = vld [vmem:[#allocation40_spill] sm:$0xff]  ;;  %v3380_v52 = vld [vmem:[#allocation41_spill] sm:$0xff] }
 0x3d5   :  { %1551 = vmatpush.msra.mxu2 %v2720_v48  ;;  %1571 = vmatpush.msra.mxu3 %v2723_v55  ;;  %v3381_v48 = vld [vmem:[#allocation42_spill] sm:$0xff]  ;;  %v3382_v55 = vld [vmem:[#allocation43_spill] sm:$0xff] }
 0x3d6   :  { %1512 = vmatpush.msra.mxu0 %v2726_v50  ;;  %1532 = vmatpush.msra.mxu1 %v2729_v44  ;;  %v3383_v50 = vld [vmem:[#allocation44_spill] sm:$0xff]  ;;  %v3384_v44 = vld [vmem:[#allocation45_spill] sm:$0xff] }
 0x3d7   :  { %1552 = vmatpush.msra.mxu2 %v2732_v51  ;;  %1572 = vmatpush.msra.mxu3 %v2735_v39 }
 0x3d8   :  { %1513 = vmatpush.msra.mxu0 %v2738_v58  ;;  %1533 = vmatpush.msra.mxu1 %v2741_v0  ;;  %v3385_v58 = vld [vmem:[#allocation62_spill] sm:$0xff] }
 0x3d9   :  { %1553 = vmatpush.msra.mxu2 %v2744_v26  ;;  %1573 = vmatpush.msra.mxu3 %v2747_v47  ;;  %v3386_v26 = vld [vmem:[#allocation63_spill] sm:$0xff] }
 0x3da   :  { %1514 = vmatpush.msra.mxu0 %v2750_v54  ;;  %1534 = vmatpush.msra.mxu1 %v2753_v46 }
 0x3db   :  { %1554 = vmatpush.msra.mxu2 %v2756_v56  ;;  %1574 = vmatpush.msra.mxu3 %v2759_v60  ;;  %v3387_v60 = vld [vmem:[#allocation64_spill] sm:$0xff] }
 0x3dc   :  { %1515 = vmatpush.msra.mxu0 %v2762_v61  ;;  %1535 = vmatpush.msra.mxu1 %v2765_v13 }
 0x3dd   :  { %1555 = vmatpush.msra.mxu2 %v3359_v59  ;;  %1575 = vmatpush.msra.mxu3 %v3360_v29 }
 0x3de   :  { %1516 = vmatpush.msra.mxu0 %v3361_v30  ;;  %1536 = vmatpush.msra.mxu1 %v3362_v31 }
 0x3df   :  { %1556 = vmatpush.msra.mxu2 %v3363_v32  ;;  %1576 = vmatpush.msra.mxu3 %v3364_v33 }
 0x3e0   :  { %1517 = vmatpush.msra.mxu0 %v3365_v34  ;;  %1537 = vmatpush.msra.mxu1 %v3366_v35 }
 0x3e1   :  { %1557 = vmatpush.msra.mxu2 %v3367_v36  ;;  %1577 = vmatpush.msra.mxu3 %v3368_v37 }
 0x3e2   :  { %1518 = vmatpush.msra.mxu0 %v3369_v38  ;;  %1538 = vmatpush.msra.mxu1 %v3370_v40 }
 0x3e3   :  { %1558 = vmatpush.msra.mxu2 %v3371_v41  ;;  %1578 = vmatpush.msra.mxu3 %v3372_v42 }
 0x3e4   :  { %1519 = vmatpush.msra.mxu0 %v3373_v43  ;;  %1539 = vmatpush.msra.mxu1 %v3374_v63 }
 0x3e5   :  { %1559 = vmatpush.msra.mxu2 %v3375_v53  ;;  %1579 = vmatpush.msra.mxu3 %v3376_v57 }
 0x3e6   :  { %1520 = vmatpush.msra.mxu0 %v3377_v45  ;;  %1540 = vmatpush.msra.mxu1 %v3378_v49 }
 0x3e7   :  { %1560 = vmatpush.msra.mxu2 %v3379_v62  ;;  %1580 = vmatpush.msra.mxu3 %v3380_v52  ;;  %v3389_v52 = vld [vmem:[#allocation66_spill] sm:$0xff] }
 0x3e8   :  { %1521 = vmatpush.msra.mxu0 %v3381_v48  ;;  %1541 = vmatpush.msra.mxu1 %v3382_v55  ;;  %v3390_v55 = vld [vmem:[#allocation67_spill] sm:$0xff] }
 0x3e9   :  { %1561 = vmatpush.msra.mxu2 %v3383_v50  ;;  %1581 = vmatpush.msra.mxu3 %v3384_v44 }
 0x445   :  { %v1215_v51 = vpop.f32.mrf.mxu0  ;;  %v1235_v39 = vpop.f32.mrf.mxu1 }
 0x446   :  { %v1278_v0 = vadd.f32 %v1215_v51, %v3385_v58  ;;  %v1279_v47 = vadd.f32 %v1235_v39, %v3386_v26  ;;  %v3391_v58 = vld [vmem:[#allocation68_spill] sm:$0xff] }
 0x448   :  { %v1724_v54 = vmul.f32 -1.442695, %v1278_v0  ;;  %v1725_v46 = vmul.f32 -1.442695, %v1279_v47 }
 0x44a   :  { %1825 = vpow2.f32 %v1724_v54 }
 0x44b   :  { %1827 = vpow2.f32 %v1725_v46 }
 0x44c   :  { %v1255_v56 = vpop.f32.mrf.mxu2  ;;  %v1275_v27 = vpop.f32.mrf.mxu3 }
 0x44d   :  { %v1280_v61 = vadd.f32 %v1255_v56, %v3387_v60  ;;  %v1281_v5 = vadd.f32 %v1275_v27, %v3388_v3 }
 0x44f   :  { %v1726_v13 = vmul.f32 -1.442695, %v1280_v61 }
 0x450   :  { %v1826_v28 = vpop.eup %1825 }
 0x451   :  { %v1828_v9 = vpop.eup %1827  ;;  %v1291_v12 = vadd.f32 1.0, %v1826_v28  ;;  %1829 = vpow2.f32 %v1726_v13 }
 0x452   :  { %v1292_v4 = vadd.f32 1.0, %v1828_v9  ;;  %v3392_v9 = vld [vmem:[#allocation69_spill] sm:$0xff] }
 0x453   :  { %1831 = vrcp.f32 %v1291_v12  ;;  %v1305_v7 = vand.u32 2147483648, %v1291_v12  ;;  %v1303_v10 = vand.u32 2147483647, %v1291_v12  ;;  %vm1299_vm14 = vweird.f32 %v1291_v12 }
 0x454   :  { %1833 = vrcp.f32 %v1292_v4  ;;  %v1320_v20 = vand.u32 2147483648, %v1292_v4  ;;  %v1318_v14 = vand.u32 2147483647, %v1292_v4  ;;  %vm1314_vm15 = vweird.f32 %v1292_v4 }
 0x455   :  { %v1306_v1 = vor.u32 1.1754944e-38, %v1305_v7  ;;  %vm1304_vm2 = vcmp.eq.f32.partialorder %v1303_v10, 8.507059e+37 }
 0x456   :  { %v1321_v29 = vor.u32 1.1754944e-38, %v1320_v20  ;;  %vm1319_vm3 = vcmp.eq.f32.partialorder %v1318_v14, 8.507059e+37 }
 0x457   :  { %v1830_v11 = vpop.eup %1829 }
 0x458   :  { %v1293_v8 = vadd.f32 1.0, %v1830_v11 }
 0x459   :  { %v1832_v15 = vpop.eup %1831 }
 0x45a   :  { %v1834_v24 = vpop.eup %1833  ;;  %v1295_v21 = vmul.f32 %v1832_v15, %v1291_v12  ;;  %1835 = vrcp.f32 %v1293_v8  ;;  %vm1300_vm12 = vweird.f32 %v1832_v15  ;;  %v1335_v42 = vand.u32 2147483648, %v1293_v8 }
 0x45b   :  { %v1310_v16 = vmul.f32 %v1834_v24, %v1292_v4  ;;  %1837 = vtanh.f32 %v1281_v5  ;;  %vm1315_vm13 = vweird.f32 %v1834_v24  ;;  %vm1301_vm0 = vmor %vm1299_vm14, %vm1300_vm12  ;;  %vm1329_vm5 = vweird.f32 %v1293_v8 }
 0x45c   :  { %v1296_v17 = vsub.f32 1.0, %v1295_v21  ;;  %vm1316_vm1 = vmor %vm1314_vm15, %vm1315_vm13  ;;  %v1333_v43 = vand.u32 2147483647, %v1293_v8  ;;  %v1336_v53 = vor.u32 1.1754944e-38, %v1335_v42 }
 0x45d   :  { %v1311_v23 = vsub.f32 1.0, %v1310_v16 }
 0x45e   :  { %v1297_v2 = vmul.f32 %v1832_v15, %v1296_v17  ;;  %vm1334_vm7 = vcmp.eq.f32.partialorder %v1333_v43, 8.507059e+37 }
 0x45f   :  { %v1312_v19 = vmul.f32 %v1834_v24, %v1311_v23 }
 0x460   :  { %v1836_v6 = vpop.eup %1835  ;;  %v1298_v18 = vadd.f32 %v1832_v15, %v1297_v2 }
 0x461   :  { %v1325_v22 = vmul.f32 %v1836_v6, %v1293_v8  ;;  %v1313_v59 = vadd.f32 %v1834_v24, %v1312_v19  ;;  %v1838_v31 = vpop.eup %1837  ;;  %vm1330_vm4 = vweird.f32 %v1836_v6 }
 0x462   :  { %v1302_v30 = vsel %vm1301_vm0, %v1832_v15, %v1298_v18  ;;  %vm1331_vm6 = vmor %vm1329_vm5, %vm1330_vm4 }
 0x463   :  { %v1326_v32 = vsub.f32 1.0, %v1325_v22  ;;  %v1307_v33 = vsel %vm1304_vm2, %v1306_v1, %v1302_v30  ;;  %v1317_v34 = vsel %vm1316_vm1, %v1834_v24, %v1313_v59 }
 0x464   :  { %v1322_v35 = vsel %vm1319_vm3, %v1321_v29, %v1317_v34  ;;  %v1341_v36 = vmul.f32 %v1838_v31, %v1307_v33 }
 0x465   :  { %v1327_v37 = vmul.f32 %v1836_v6, %v1326_v32  ;;  %v1340_v38 = vmul.f32 %v1322_v35, %v2995_v25 }
 0x467   :  { %v3067_v40 = vadd.f32 %v1341_v36, %v1340_v38  ;;  %v1328_v41 = vadd.f32 %v1836_v6, %v1327_v37 }
 0x469   :  { %1839 = vtanh.f32 %v3067_v40  ;;  %v1332_v63 = vsel %vm1331_vm6, %v1836_v6, %v1328_v41 }
 0x46a   :  { %v1337_v45 = vsel %vm1334_vm7, %v1336_v53, %v1332_v63  ;;  %v3393_v63 = vld [vmem:[#allocation70_spill] sm:$0xff] }
 0x46f   :  { %v1840_v57 = vpop.eup %1839 }
 0x470   :  { %v1344_v49 = vmul.f32 %v1840_v57, %v1337_v45  ;;  %v3394_v57 = vld [vmem:[#allocation71_spill] sm:$0xff] }
 0x472   :  { %1346 = vst [vmem:[#allocation11 + $0x28] sm:$0xff] %v1344_v49  ;;  %1368 = vmatmul.f32.vlgmr.msrb.gmra.mxu0 %v1344_v49  ;;  %1388 = vmatmul.f32.vlgmr.msrb.gmra.mxu1 %v1344_v49 }
 0x473   :  { %1408 = vmatmul.f32.vlgmr.msrb.gmra.mxu2 %v1344_v49  ;;  %1428 = vmatmul.f32.vlgmr.msrb.gmra.mxu3 %v1344_v49 }
 0x4ef   :  { %v1369_v25 = vpop.f32.mrf.mxu0  ;;  %v1389_v62 = vpop.f32.mrf.mxu1 }
 0x4f0   :  { %v1432_v48 = vadd.f32 %v1369_v25, %v3389_v52  ;;  %v1433_v50 = vadd.f32 %v1389_v62, %v3390_v55  ;;  %v3395_v52 = vld [vmem:[#allocation72_spill] sm:$0xff] }
 0x4f2   :  { %v1727_v44 = vmul.f32 -1.442695, %v1432_v48  ;;  %v1728_v51 = vmul.f32 -1.442695, %v1433_v50 }
 0x4f4   :  { %1841 = vpow2.f32 %v1727_v44 }
 0x4f5   :  { %1843 = vpow2.f32 %v1728_v51 }
 0x4f6   :  { %v1409_v39 = vpop.f32.mrf.mxu2  ;;  %v1429_v60 = vpop.f32.mrf.mxu3 }
 0x4f7   :  { %v1434_v0 = vadd.f32 %v1409_v39, %v3391_v58  ;;  %v1435_v12 = vadd.f32 %v1429_v60, %v3392_v9 }
 0x4f9   :  { %v1729_v26 = vmul.f32 -1.442695, %v1434_v0 }
 0x4fa   :  { %v1842_v47 = vpop.eup %1841 }
 0x4fb   :  { %v1844_v54 = vpop.eup %1843  ;;  %v1445_v46 = vadd.f32 1.0, %v1842_v47  ;;  %1845 = vpow2.f32 %v1729_v26 }
 0x4fc   :  { %v1446_v56 = vadd.f32 1.0, %v1844_v54  ;;  %v3396_v54 = vld [vmem:[#allocation73_spill] sm:$0xff] }
 0x4fd   :  { %1847 = vrcp.f32 %v1445_v46  ;;  %v1459_v3 = vand.u32 2147483648, %v1445_v46  ;;  %v1457_v21 = vand.u32 2147483647, %v1445_v46  ;;  %vm1453_vm10 = vweird.f32 %v1445_v46 }
 0x4fe   :  { %1849 = vrcp.f32 %v1446_v56  ;;  %v1474_v5 = vand.u32 2147483648, %v1446_v56  ;;  %v1472_v17 = vand.u32 2147483647, %v1446_v56  ;;  %vm1468_vm11 = vweird.f32 %v1446_v56 }
 0x4ff   :  { %v1460_v2 = vor.u32 1.1754944e-38, %v1459_v3  ;;  %vm1458_vm14 = vcmp.eq.f32.partialorder %v1457_v21, 8.507059e+37 }
 0x500   :  { %v1475_v19 = vor.u32 1.1754944e-38, %v1474_v5  ;;  %vm1473_vm15 = vcmp.eq.f32.partialorder %v1472_v17, 8.507059e+37 }
 0x501   :  { %v1846_v61 = vpop.eup %1845 }
 0x502   :  { %v1447_v13 = vadd.f32 1.0, %v1846_v61 }
 0x503   :  { %v1848_v28 = vpop.eup %1847 }
 0x504   :  { %v1850_v4 = vpop.eup %1849  ;;  %v1449_v27 = vmul.f32 %v1848_v28, %v1445_v46  ;;  %1851 = vrcp.f32 %v1447_v13  ;;  %vm1454_vm8 = vweird.f32 %v1848_v28  ;;  %v1489_v34 = vand.u32 2147483648, %v1447_v13 }
 0x505   :  { %v1464_v11 = vmul.f32 %v1850_v4, %v1446_v56  ;;  %1853 = vtanh.f32 %v1435_v12  ;;  %vm1469_vm9 = vweird.f32 %v1850_v4  ;;  %vm1455_vm12 = vmor %vm1453_vm10, %vm1454_vm8  ;;  %vm1483_vm1 = vweird.f32 %v1447_v13 }
 0x506   :  { %v1450_v8 = vsub.f32 1.0, %v1449_v27  ;;  %vm1470_vm13 = vmor %vm1468_vm11, %vm1469_vm9  ;;  %v1487_v35 = vand.u32 2147483647, %v1447_v13  ;;  %v1490_v37 = vor.u32 1.1754944e-38, %v1489_v34 }
 0x507   :  { %v1465_v15 = vsub.f32 1.0, %v1464_v11 }
 0x508   :  { %v1451_v24 = vmul.f32 %v1848_v28, %v1450_v8  ;;  %vm1488_vm3 = vcmp.eq.f32.partialorder %v1487_v35, 8.507059e+37 }
 0x509   :  { %v1466_v16 = vmul.f32 %v1850_v4, %v1465_v15 }
 0x50a   :  { %v1852_v23 = vpop.eup %1851  ;;  %v1452_v7 = vadd.f32 %v1848_v28, %v1451_v24 }
 0x50b   :  { %v1479_v20 = vmul.f32 %v1852_v23, %v1447_v13  ;;  %v1467_v10 = vadd.f32 %v1850_v4, %v1466_v16  ;;  %v1854_v6 = vpop.eup %1853  ;;  %vm1484_vm0 = vweird.f32 %v1852_v23 }
 0x50c   :  { %v1456_v14 = vsel %vm1455_vm12, %v1848_v28, %v1452_v7  ;;  %vm1485_vm2 = vmor %vm1483_vm1, %vm1484_vm0 }
 0x50d   :  { %v1480_v18 = vsub.f32 1.0, %v1479_v20  ;;  %v1461_v22 = vsel %vm1458_vm14, %v1460_v2, %v1456_v14  ;;  %v1471_v1 = vsel %vm1470_vm13, %v1850_v4, %v1467_v10 }
 0x50e   :  { %v1476_v59 = vsel %vm1473_vm15, %v1475_v19, %v1471_v1  ;;  %v1495_v29 = vmul.f32 %v1854_v6, %v1461_v22 }
 0x50f   :  { %v1481_v30 = vmul.f32 %v1852_v23, %v1480_v18  ;;  %v1494_v31 = vmul.f32 %v1476_v59, %v3067_v40 }
 0x511   :  { %v3075_v32 = vadd.f32 %v1495_v29, %v1494_v31  ;;  %v1482_v33 = vadd.f32 %v1852_v23, %v1481_v30 }
 0x513   :  { %1855 = vtanh.f32 %v3075_v32  ;;  %v1486_v36 = vsel %vm1485_vm2, %v1852_v23, %v1482_v33 }
 0x514   :  { %v1491_v41 = vsel %vm1488_vm3, %v1490_v37, %v1486_v36 }
 0x519   :  { %v1856_v38 = vpop.eup %1855 }
 0x51a   :  { %v1498_v42 = vmul.f32 %v1856_v38, %v1491_v41 }
 0x51c   :  { %1500 = vst [vmem:[#allocation11 + $0x30] sm:$0xff] %v1498_v42  ;;  %1522 = vmatmul.f32.vlgmr.msra.gmra.mxu0 %v1498_v42  ;;  %1542 = vmatmul.f32.vlgmr.msra.gmra.mxu1 %v1498_v42 }
 0x51d   :  { %1562 = vmatmul.f32.vlgmr.msra.gmra.mxu2 %v1498_v42  ;;  %1582 = vmatmul.f32.vlgmr.msra.gmra.mxu3 %v1498_v42 }
 0x599   :  { %v1523_v40 = vpop.f32.mrf.mxu0  ;;  %v1543_v43 = vpop.f32.mrf.mxu1 }
 0x59a   :  { %v1586_v53 = vadd.f32 %v1523_v40, %v3393_v63  ;;  %v1587_v45 = vadd.f32 %v1543_v43, %v3394_v57 }
 0x59c   :  { %v1730_v49 = vmul.f32 -1.442695, %v1586_v53  ;;  %v1731_v25 = vmul.f32 -1.442695, %v1587_v45 }
 0x59e   :  { %1857 = vpow2.f32 %v1730_v49 }
 0x59f   :  { %1859 = vpow2.f32 %v1731_v25 }
 0x5a0   :  { %v1563_v62 = vpop.f32.mrf.mxu2  ;;  %v1583_v58 = vpop.f32.mrf.mxu3 }
 0x5a1   :  { %v1588_v48 = vadd.f32 %v1563_v62, %v3395_v52  ;;  %v1589_v46 = vadd.f32 %v1583_v58, %v3396_v54 }
 0x5a3   :  { %v1732_v55 = vmul.f32 -1.442695, %v1588_v48 }
 0x5a4   :  { %v1858_v50 = vpop.eup %1857 }
 0x5a5   :  { %v1860_v44 = vpop.eup %1859  ;;  %v1599_v51 = vadd.f32 1.0, %v1858_v50  ;;  %1861 = vpow2.f32 %v1732_v55 }
 0x5a6   :  { %v1600_v39 = vadd.f32 1.0, %v1860_v44 }
 0x5a7   :  { %1863 = vrcp.f32 %v1599_v51  ;;  %v1613_v9 = vand.u32 2147483648, %v1599_v51  ;;  %v1611_v27 = vand.u32 2147483647, %v1599_v51  ;;  %vm1607_vm6 = vweird.f32 %v1599_v51 }
 0x5a8   :  { %1865 = vrcp.f32 %v1600_v39  ;;  %v1628_v12 = vand.u32 2147483648, %v1600_v39  ;;  %v1626_v8 = vand.u32 2147483647, %v1600_v39  ;;  %vm1622_vm7 = vweird.f32 %v1600_v39 }
 0x5a9   :  { %v1614_v24 = vor.u32 1.1754944e-38, %v1613_v9  ;;  %vm1612_vm10 = vcmp.eq.f32.partialorder %v1611_v27, 8.507059e+37 }
 0x5aa   :  { %v1629_v16 = vor.u32 1.1754944e-38, %v1628_v12  ;;  %vm1627_vm11 = vcmp.eq.f32.partialorder %v1626_v8, 8.507059e+37 }
 0x5ab   :  { %v1862_v0 = vpop.eup %1861 }
 0x5ac   :  { %v1601_v26 = vadd.f32 1.0, %v1862_v0 }
 0x5ad   :  { %v1864_v47 = vpop.eup %1863 }
 0x5ae   :  { %v1866_v56 = vpop.eup %1865  ;;  %v1603_v60 = vmul.f32 %v1864_v47, %v1599_v51  ;;  %1867 = vrcp.f32 %v1601_v26  ;;  %vm1608_vm4 = vweird.f32 %v1864_v47  ;;  %v1643_v1 = vand.u32 2147483648, %v1601_v26 }
 0x5af   :  { %v1618_v61 = vmul.f32 %v1866_v56, %v1600_v39  ;;  %1869 = vtanh.f32 %v1589_v46  ;;  %vm1623_vm5 = vweird.f32 %v1866_v56  ;;  %vm1609_vm8 = vmor %vm1607_vm6, %vm1608_vm4  ;;  %vm1637_vm13 = vweird.f32 %v1601_v26 }
 0x5b0   :  { %v1604_v13 = vsub.f32 1.0, %v1603_v60  ;;  %vm1624_vm9 = vmor %vm1622_vm7, %vm1623_vm5  ;;  %v1641_v59 = vand.u32 2147483647, %v1601_v26  ;;  %v1644_v30 = vor.u32 1.1754944e-38, %v1643_v1 }
 0x5b1   :  { %v1619_v28 = vsub.f32 1.0, %v1618_v61 }
 0x5b2   :  { %v1605_v4 = vmul.f32 %v1864_v47, %v1604_v13  ;;  %vm1642_vm15 = vcmp.eq.f32.partialorder %v1641_v59, 8.507059e+37 }
 0x5b3   :  { %v1620_v11 = vmul.f32 %v1866_v56, %v1619_v28 }
 0x5b4   :  { %v1868_v15 = vpop.eup %1867  ;;  %v1606_v3 = vadd.f32 %v1864_v47, %v1605_v4 }
 0x5b5   :  { %v1633_v5 = vmul.f32 %v1868_v15, %v1601_v26  ;;  %v1621_v21 = vadd.f32 %v1866_v56, %v1620_v11  ;;  %v1870_v23 = vpop.eup %1869  ;;  %vm1638_vm12 = vweird.f32 %v1868_v15 }
 0x5b6   :  { %v1610_v17 = vsel %vm1609_vm8, %v1864_v47, %v1606_v3  ;;  %vm1639_vm14 = vmor %vm1637_vm13, %vm1638_vm12 }
 0x5b7   :  { %v1634_v7 = vsub.f32 1.0, %v1633_v5  ;;  %v1615_v20 = vsel %vm1612_vm10, %v1614_v24, %v1610_v17  ;;  %v1625_v2 = vsel %vm1624_vm9, %v1866_v56, %v1621_v21 }
 0x5b8   :  { %v1630_v10 = vsel %vm1627_vm11, %v1629_v16, %v1625_v2  ;;  %v1649_v19 = vmul.f32 %v1870_v23, %v1615_v20 }
 0x5b9   :  { %v1648_v14 = vmul.f32 %v1630_v10, %v3075_v32  ;;  %v1635_v6 = vmul.f32 %v1868_v15, %v1634_v7 }
 0x5bb   :  { %v1650_v18 = vadd.f32 %v1649_v19, %v1648_v14  ;;  %v1636_v22 = vadd.f32 %v1868_v15, %v1635_v6 }
 0x5bd   :  { %1871 = vtanh.f32 %v1650_v18  ;;  %1656 = vst [vmem:[#allocation14] sm:$0xff] %v1650_v18  ;;  %v1640_v29 = vsel %vm1639_vm14, %v1868_v15, %v1636_v22 }
 0x5be   :  { %v1645_v32 = vsel %vm1642_vm15, %v1644_v30, %v1640_v29 }
 0x5c3   :  { %v1872_v31 = vpop.eup %1871 }
 0x5c4   :  { %v1652_v33 = vmul.f32 %v1872_v31, %v1645_v32 }
 0x5c6   :  { %1654 = vst [vmem:[#allocation11 + $0x38] sm:$0xff] %v1652_v33 }
 0x5c7   :  { %1655 = vst [vmem:[#allocation12] sm:$0xff] %v1652_v33  ;;  %1669 = dma.vmem_to_hbm [thread:$0]  %s1662_s3, 1024, %s1664_s21, [#allocation5], %s2119_s9, %s2119_s9, %s2120_s10  }
 0x5c8   :  { %1680 = dma.vmem_to_hbm [thread:$0]  %s1676_s23, 128, %s1678_s26, [#allocation13]  }
 0x5c9   :  { %1691 = dma.vmem_to_hbm [thread:$0]  %s1687_s28, 128, %s1689_s7, [#allocation13]  }
 0x5ca   :  { %2111 = dma.done.wait [#allocation5], 1024  }
 0x5cb   :  { %2112 = vsyncadd [#allocation5], 4294966272 }
 0x5cc   :  { %2113 = dma.done.wait [#allocation13], 256  }
 0x5cd   :  { %2114 = vsyncadd [#allocation13], 4294967040 }
 0x5ce   :  { %1704 = vsyncpa [#allocation4], 1 }
 0x5cf   :  { %1705 = vsyncpa [#allocation7], 1 }
 0x5d0   :  { %1706 = vsyncpa [#allocation10], 1 }
 0x5d1   :  { %1707 = vsyncpa [#allocation5], 1 }
 0x5d2   :  { %1708 = vsyncpa [#allocation13], 1 }

</bundles_post_ra>
